<compile_context>
chip_gen: v7x
topology: tpu7x:2x2x1
jax: 0.10.0
libtpu: 0.0.40
codegen_flags: <defaults>
</compile_context>

<pallas_src>
import numpy as np
import jax
import jax.numpy as jnp
from jax.experimental import pallas as pl
from jax.experimental.pallas import tpu as pltpu

_HI = jax.lax.Precision.HIGHEST


# -----------------------------------------------------------------------------
# Wrapper-side weight/constant transforms (run once, outside the hot path)
# -----------------------------------------------------------------------------

def _bn_fold(bn, eps=1e-5):
    scale = bn["gamma"] / jnp.sqrt(bn["running_var"] + eps)
    shift = bn["beta"] - bn["running_mean"] * scale
    return scale, shift


def _conv_same_as_matrix(w, b, stride, l_in):
    """SAME-pad 1D conv (groups=1) lowered to a (Cin*Lin, Cout*Lout) matrix
    acting on (N, C*L) activation rows.  Exactly matches MyConv1dPadSame."""
    cout, cin, k = w.shape
    l_out = -(-l_in // stride)
    p = max(0, (l_out - 1) * stride + k - l_in)
    pad_l = p // 2
    j = np.arange(l_in)[:, None, None]
    kk = np.arange(k)[None, :, None]
    ll = np.arange(l_out)[None, None, :]
    sel = (j == (ll * stride + kk - pad_l)).astype(np.float32)  # OOB src -> 0 == zero pad
    t_mat = jnp.einsum("ock,jkl->cjol", w, jnp.asarray(sel), precision=_HI)
    t_mat = t_mat.reshape(cin * l_in, cout * l_out)
    bias = jnp.repeat(b, l_out).reshape(1, cout * l_out)
    return t_mat, bias, l_out


def _maxpool_same_mats(c, l_in, ksz):
    """MyMaxPool1dPadSame (zero pad, pool stride == kernel) as ksz selection
    matrices; zero columns reproduce the constant-0 padding."""
    p = max(0, ksz - 1)
    pad_l = p // 2
    n_out = (l_in + p - ksz) // ksz + 1
    mats = np.zeros((ksz, c * l_in, c * n_out), np.float32)
    for kk in range(ksz):
        for l in range(n_out):
            j = l * ksz + kk - pad_l
            if 0 <= j < l_in:
                for ci in range(c):
                    mats[kk, ci * l_in + j, ci * n_out + l] = 1.0
    return mats, n_out


def _chanpad_matrix(c_in, c_out, l, ch1):
    m = np.zeros((c_in * l, c_out * l), np.float32)
    for ci in range(c_in):
        for j in range(l):
            m[ci * l + j, (ci + ch1) * l + j] = 1.0
    return m


def _mean_matrix(c, l):
    m = np.zeros((c * l, c), np.float32)
    for ci in range(c):
        for j in range(l):
            m[ci * l + j, ci] = 1.0 / l
    return m


def prepare_fused(params, block_cfgs, *, n_length, n_samples, stride, use_bn=True):
    """Fold BN into conv matrices, lower every layer to matmul / elementwise ops
    on an (N, width) activation, and pack all constants into two stacked arrays
    (matrices (Nm, W, W), row-vectors (Nv, 1, W)) so the kernel has 3 inputs."""
    use_bn_top = use_bn and (n_samples >= 4)   # ResNet1D.forward: batch<4 -> top BNs off
    mats, vecs, plan = [], [], []

    def push_m(m):
        mats.append(jnp.asarray(m, jnp.float32))
        return len(mats) - 1

    def push_v(v):
        vecs.append(jnp.asarray(v, jnp.float32).reshape(-1))
        return len(vecs) - 1

    def rep(v, l):
        return jnp.repeat(v, l)[None, :]

    length = n_length
    cin0 = params["first_conv"]["w"].shape[1]
    c_cur = params["first_conv"]["w"].shape[0]

    # first conv (+ folded first_bn when active) + ReLU
    t_mat, bias, length = _conv_same_as_matrix(
        params["first_conv"]["w"], params["first_conv"]["b"], 1, length)
    if use_bn_top:
        s, t = _bn_fold(params["first_bn"])
        s_r, t_r = rep(s, length), rep(t, length)
        t_mat, bias = t_mat * s_r, bias * s_r + t_r
    plan.append(("mmb_relu", push_m(t_mat), push_v(bias)))

    # first maxpool (kernel == stride)
    if stride > 1:
        pm, length = _maxpool_same_mats(c_cur, length, stride)
        plan.append(("pool_a", tuple(push_m(pm[kk]) for kk in range(stride))))

    for bp, cfg in zip(params["blocks"], block_cfgs):
        in_ch, out_ch = cfg["in_ch"], cfg["out_ch"]
        plan.append(("save_id",))
        if not cfg["is_first"]:
            if use_bn:
                s, t = _bn_fold(bp["bn1"])
                plan.append(("ssr", push_v(rep(s, length)), push_v(rep(t, length))))
            else:
                plan.append(("relu",))
            # TODO(synk): nn.Dropout (use_do=True, training) is stochastic; this config
            # runs with use_do=False (== eval identity), so nothing is emitted.
        l_id = length
        # conv1 (+ folded bn2) + ReLU
        t_mat, bias, length = _conv_same_as_matrix(
            bp["conv1"]["w"], bp["conv1"]["b"], cfg["stride"], length)
        if use_bn:
            s, t = _bn_fold(bp["bn2"])
            s_r, t_r = rep(s, length), rep(t, length)
            t_mat, bias = t_mat * s_r, bias * s_r + t_r
        plan.append(("mmb_relu", push_m(t_mat), push_v(bias)))
        # conv2 (residual add follows, no activation)
        t_mat, bias, _ = _conv_same_as_matrix(bp["conv2"]["w"], bp["conv2"]["b"], 1, length)
        plan.append(("mmb", push_m(t_mat), push_v(bias)))
        # identity path: maxpool downsample and/or zero channel pad
        if cfg["downsample"] and cfg["stride"] > 1:
            pm, _ = _maxpool_same_mats(in_ch, l_id, cfg["stride"])
            plan.append(("pool_id", tuple(push_m(pm[kk]) for kk in range(cfg["stride"]))))
        if out_ch != in_ch:
            ch1 = (out_ch - in_ch) // 2
            plan.append(("mm_id", push_m(_chanpad_matrix(in_ch, out_ch, length, ch1))))
        plan.append(("add_id",))
        c_cur = out_ch

    # final (maybe) BN + ReLU, then mean(-1) and classifier
    if use_bn_top:
        s, t = _bn_fold(params["final_bn"])
        plan.append(("ssr", push_v(rep(s, length)), push_v(rep(t, length))))
    else:
        plan.append(("relu",))
    plan.append(("mean", push_m(_mean_matrix(c_cur, length))))
    plan.append(("linear", push_m(jnp.transpose(params["clf"]["w"])),
                 push_v(params["clf"]["b"])))
    out_size = params["clf"]["w"].shape[0]

    # Common lane-dense width: one multiple of 128 covering every operand.
    dims = [cin0 * n_length]
    for m in mats:
        dims += list(m.shape)
    for v in vecs:
        dims.append(v.shape[0])
    width = max(128, -(-max(dims) // 128) * 128)

    mats_stack = jnp.stack(
        [jnp.pad(m, ((0, width - m.shape[0]), (0, width - m.shape[1]))) for m in mats])
    vecs_stack = jnp.stack(
        [jnp.pad(v, (0, width - v.shape[0]))[None, :] for v in vecs])   # (Nv, 1, W)
    return plan, mats_stack, vecs_stack, width, c_cur, out_size


# -----------------------------------------------------------------------------
# The single fused Pallas kernel
# -----------------------------------------------------------------------------

def make_fused_kernel(plan, c_final, out_size):
    def kernel(x_ref, mats_ref, vecs_ref, logits_ref, h_ref):
        def mm(a, m):
            return jnp.dot(a, m, preferred_element_type=jnp.float32)

        def mat(i):            # (W, W) constant tile
            return mats_ref[i]

        def vec(i):            # (1, W) row vector
            return vecs_ref[i]

        a = x_ref[...]         # (N, W) lane-dense, zero-padded; stays vreg/VMEM resident
        identity = None
        for op in plan:        # static plan -> fully unrolled at trace time
            kind = op[0]
            if kind == "mmb_relu":     # conv (+folded BN) + ReLU
                a = jnp.maximum(mm(a, mat(op[1])) + vec(op[2]), 0.0)
            elif kind == "mmb":        # conv
                a = mm(a, mat(op[1])) + vec(op[2])
            elif kind == "ssr":        # eval BN scale/shift + ReLU
                a = jnp.maximum(a * vec(op[1]) + vec(op[2]), 0.0)
            elif kind == "relu":
                a = jnp.maximum(a, 0.0)
            elif kind == "save_id":
                identity = a
            elif kind == "pool_a":     # SAME maxpool on main path (max of selection matmuls)
                idxs = op[1]
                r = mm(a, mat(idxs[0]))
                for mi in idxs[1:]:
                    r = jnp.maximum(r, mm(a, mat(mi)))
                a = r
            elif kind == "pool_id":    # SAME maxpool on identity path
                idxs = op[1]
                r = mm(identity, mat(idxs[0]))
                for mi in idxs[1:]:
                    r = jnp.maximum(r, mm(identity, mat(mi)))
                identity = r
            elif kind == "mm_id":      # zero channel pad of identity
                identity = mm(identity, mat(op[1]))
            elif kind == "add_id":     # residual add
                a = a + identity
            elif kind == "mean":       # mean over L
                a = mm(a, mat(op[1]))
                h_ref[...] = a[:, :c_final]
            elif kind == "linear":     # classifier
                logits_ref[...] = (mm(a, mat(op[1])) + vec(op[2]))[:, :out_size]
    return kernel


def resnet1d_forward_fused(plan, mats, vecs, x, *, width, c_final, out_size):
    n, cin, l = x.shape
    x2d = jnp.pad(x.reshape(n, cin * l), ((0, 0), (0, width - cin * l)))
    kernel = make_fused_kernel(plan, c_final, out_size)
    logits, h = pl.pallas_call(
        kernel,
        out_shape=(jax.ShapeDtypeStruct((n, out_size), jnp.float32),
                   jax.ShapeDtypeStruct((n, c_final), jnp.float32)),
        in_specs=[pl.BlockSpec(memory_space=pltpu.MemorySpace.VMEM)] * 3,
        out_specs=(pl.BlockSpec(memory_space=pltpu.MemorySpace.VMEM),
                   pl.BlockSpec(memory_space=pltpu.MemorySpace.VMEM)),
    )(x2d, mats, vecs)
    return logits, h


# -----------------------------------------------------------------------------
# Parameter init (deterministic, synthetic)
# -----------------------------------------------------------------------------

def init_params(key, in_channels, base_filters, first_kernel_size, kernel_size,
                stride, n_block, output_size, downsample_gap=2, increasefilter_gap=2):
    keys = iter(jax.random.split(key, 256))

    def conv_init(cout, cin, k):
        return {"w": 0.1 * jax.random.normal(next(keys), (cout, cin, k), jnp.float32),
                "b": 0.05 * jax.random.normal(next(keys), (cout,), jnp.float32)}

    def bn_init(c):
        return {"gamma": 1.0 + 0.1 * jax.random.normal(next(keys), (c,), jnp.float32),
                "beta": 0.1 * jax.random.normal(next(keys), (c,), jnp.float32),
                "running_mean": 0.1 * jax.random.normal(next(keys), (c,), jnp.float32),
                "running_var": 1.0 + 0.1 * jnp.abs(jax.random.normal(next(keys), (c,), jnp.float32))}

    params = {"first_conv": conv_init(base_filters, in_channels, first_kernel_size),
              "first_bn": bn_init(base_filters)}
    blocks, block_cfgs = [], []
    out_channels = base_filters
    for i_block in range(n_block):
        is_first = (i_block == 0)
        downsample = (i_block % downsample_gap) == 1
        if is_first:
            in_ch = base_filters
            out_channels = in_ch
        else:
            in_ch = int(base_filters * 2 ** ((i_block - 1) // increasefilter_gap))
            if i_block % increasefilter_gap == 0 and i_block != 0:
                out_channels = in_ch * 2
            else:
                out_channels = in_ch
        blk_stride = stride if downsample else 1
        blocks.append({"bn1": bn_init(in_ch),
                       "conv1": conv_init(out_channels, in_ch, kernel_size),
                       "bn2": bn_init(out_channels),
                       "conv2": conv_init(out_channels, out_channels, kernel_size)})
        block_cfgs.append({"in_ch": in_ch, "out_ch": out_channels, "stride": blk_stride,
                           "downsample": downsample, "is_first": is_first})
    params["blocks"] = blocks
    params["final_bn"] = bn_init(out_channels)
    params["clf"] = {"w": 0.1 * jax.random.normal(next(keys), (output_size, out_channels), jnp.float32),
                     "b": 0.05 * jax.random.normal(next(keys), (output_size,), jnp.float32)}
    return params, block_cfgs


# -----------------------------------------------------------------------------
# Pure-JAX reference (independent path) for an in-script correctness check
# -----------------------------------------------------------------------------

def _ref_conv1d_same(x, w, b, stride):
    n, cin, l = x.shape
    cout, _, k = w.shape
    lout = -(-l // stride)
    p = max(0, (lout - 1) * stride + k - l)
    pad_l, pad_r = p // 2, p - p // 2
    xp = jnp.pad(x, ((0, 0), (0, 0), (pad_l, pad_r)))
    cols = [xp[:, :, kk: kk + stride * (lout - 1) + 1: stride] for kk in range(k)]
    patches = jnp.stack(cols, axis=2).reshape(n, cin * k, lout)
    return jnp.einsum("oc,ncl->nol", w.reshape(cout, cin * k), patches,
                      precision=_HI) + b[None, :, None]


def _ref_maxpool_same(x, ksz):
    if ksz == 1:
        return x
    n, c, l = x.shape
    p = max(0, ksz - 1)
    pad_l, pad_r = p // 2, p - p // 2
    xp = jnp.pad(x, ((0, 0), (0, 0), (pad_l, pad_r)))
    lp = xp.shape[-1]
    n_out = (lp - ksz) // ksz + 1
    ws = jnp.stack([xp[:, :, kk: kk + ksz * (n_out - 1) + 1: ksz] for kk in range(ksz)], 0)
    return jnp.max(ws, axis=0)


def _ref_forward(params, block_cfgs, x, *, stride, use_bn=True):
    n = x.shape[0]
    use_bn_top = use_bn and (n >= 4)
    out = _ref_conv1d_same(x, params["first_conv"]["w"], params["first_conv"]["b"], 1)
    if use_bn_top:
        s, t = _bn_fold(params["first_bn"])
        out = out * s[None, :, None] + t[None, :, None]
    out = jnp.maximum(out, 0.0)
    out = _ref_maxpool_same(out, stride)
    for bp, cfg in zip(params["blocks"], block_cfgs):
        identity = out
        o = out
        if not cfg["is_first"]:
            if use_bn:
                s, t = _bn_fold(bp["bn1"])
                o = o * s[None, :, None] + t[None, :, None]
            o = jnp.maximum(o, 0.0)
        o = _ref_conv1d_same(o, bp["conv1"]["w"], bp["conv1"]["b"], cfg["stride"])
        if use_bn:
            s, t = _bn_fold(bp["bn2"])
            o = o * s[None, :, None] + t[None, :, None]
        o = jnp.maximum(o, 0.0)
        o = _ref_conv1d_same(o, bp["conv2"]["w"], bp["conv2"]["b"], 1)
        if cfg["downsample"]:
            identity = _ref_maxpool_same(identity, cfg["stride"])
        if cfg["out_ch"] != cfg["in_ch"]:
            ch1 = (cfg["out_ch"] - cfg["in_ch"]) // 2
            ch2 = cfg["out_ch"] - cfg["in_ch"] - ch1
            identity = jnp.pad(identity, ((0, 0), (ch1, ch2), (0, 0)))
        out = o + identity
    if use_bn_top:
        s, t = _bn_fold(params["final_bn"])
        out = out * s[None, :, None] + t[None, :, None]
    h = jnp.maximum(out, 0.0).mean(-1)
    logits = jnp.dot(h, params["clf"]["w"].T, precision=_HI) + params["clf"]["b"]
    return logits, h


# -----------------------------------------------------------------------------
# Demo
# -----------------------------------------------------------------------------

if __name__ == "__main__":
    # ResNet1D(in_channels=4, base_filters=8, first_kernel_size=7, kernel_size=3,
    #          stride=2, groups=1, n_block=4, output_size=5, use_bn=True, use_do=False)
    in_channels, base_filters = 4, 8
    first_kernel_size, kernel_size, stride = 7, 3, 2
    n_block, output_size = 4, 5
    n_samples, n_length = 2, 16

    key = jax.random.PRNGKey(0)
    kp, kx = jax.random.split(key)
    params, block_cfgs = init_params(kp, in_channels, base_filters, first_kernel_size,
                                     kernel_size, stride, n_block, output_size)
    x = jax.random.normal(kx, (n_samples, in_channels, n_length), jnp.float32)

    plan, mats, vecs, width, c_final, out_size = prepare_fused(
        params, block_cfgs, n_length=n_length, n_samples=n_samples,
        stride=stride, use_bn=True)

    logits, h = resnet1d_forward_fused(plan, mats, vecs, x,
                                       width=width, c_final=c_final, out_size=out_size)
    jax.block_until_ready((logits, h))

    # Shape / sanity checks + cross-check against an independent pure-JAX path.
    assert logits.shape == (n_samples, output_size)
    assert h.shape == (n_samples, c_final) and c_final == 16
    assert jnp.all(jnp.isfinite(logits)) and jnp.all(jnp.isfinite(h))
    logits_ref, h_ref = _ref_forward(params, block_cfgs, x, stride=stride, use_bn=True)
    assert jnp.allclose(h, h_ref, rtol=2e-2, atol=2e-2), float(jnp.max(jnp.abs(h - h_ref)))
    assert jnp.allclose(logits, logits_ref, rtol=2e-2, atol=2e-2), float(jnp.max(jnp.abs(logits - logits_ref)))
    print("KERNEL_OK")
</pallas_src>

<mosaic_0001>
module attributes {stable_mosaic.version = 11 : i64} {
  func.func @kernel(%arg0: memref<2x128xf32, #tpu.memory_space<vmem>>, %arg1: memref<18x128x128xf32, #tpu.memory_space<vmem>>, %arg2: memref<16x1x128xf32, #tpu.memory_space<vmem>>, %arg3: memref<2x5xf32, #tpu.memory_space<vmem>>, %arg4: memref<2x16xf32, #tpu.memory_space<vmem>>) attributes {dimension_semantics = [], scalar_prefetch = 0 : i64, scratch_operands = 0 : i64, tpu.core_type = #tpu.core_type<tc>} {
    %c0 = arith.constant 0 : index
    %c0_0 = arith.constant 0 : index
    %0 = vector.load %arg0[%c0, %c0_0] : memref<2x128xf32, #tpu.memory_space<vmem>>, vector<2x128xf32>
    %c0_1 = arith.constant 0 : index
    %c0_2 = arith.constant 0 : index
    %c0_3 = arith.constant 0 : index
    %1 = vector.load %arg1[%c0_1, %c0_2, %c0_3] : memref<18x128x128xf32, #tpu.memory_space<vmem>>, vector<1x128x128xf32>
    %2 = vector.shape_cast %1 : vector<1x128x128xf32> to vector<128x128xf32>
    %cst = arith.constant dense<0.000000e+00> : vector<2x128xf32>
    %3 = tpu.matmul %0, %2, %cst {dimension_numbers = #tpu.dot_dimension_numbers<[1], [0], [0], [1], [0, 0, 1, 1], [], []>} : vector<2x128xf32>, vector<128x128xf32>, vector<2x128xf32> -> vector<2x128xf32>
    %c0_4 = arith.constant 0 : index
    %c0_5 = arith.constant 0 : index
    %c0_6 = arith.constant 0 : index
    %4 = vector.load %arg2[%c0_4, %c0_5, %c0_6] : memref<16x1x128xf32, #tpu.memory_space<vmem>>, vector<1x1x128xf32>
    %5 = vector.shape_cast %4 : vector<1x1x128xf32> to vector<1x128xf32>
    %6 = vector.broadcast %5 : vector<1x128xf32> to vector<2x128xf32>
    %7 = arith.addf %3, %6 : vector<2x128xf32>
    %cst_7 = arith.constant 0.000000e+00 : f32
    %8 = vector.broadcast %cst_7 : f32 to vector<2x128xf32>
    %9 = arith.maximumf %7, %8 : vector<2x128xf32>
    %c1 = arith.constant 1 : index
    %c0_8 = arith.constant 0 : index
    %c0_9 = arith.constant 0 : index
    %10 = vector.load %arg1[%c1, %c0_8, %c0_9] : memref<18x128x128xf32, #tpu.memory_space<vmem>>, vector<1x128x128xf32>
    %11 = vector.shape_cast %10 : vector<1x128x128xf32> to vector<128x128xf32>
    %cst_10 = arith.constant dense<0.000000e+00> : vector<2x128xf32>
    %12 = tpu.matmul %9, %11, %cst_10 {dimension_numbers = #tpu.dot_dimension_numbers<[1], [0], [0], [1], [0, 0, 1, 1], [], []>} : vector<2x128xf32>, vector<128x128xf32>, vector<2x128xf32> -> vector<2x128xf32>
    %c2 = arith.constant 2 : index
    %c0_11 = arith.constant 0 : index
    %c0_12 = arith.constant 0 : index
    %13 = vector.load %arg1[%c2, %c0_11, %c0_12] : memref<18x128x128xf32, #tpu.memory_space<vmem>>, vector<1x128x128xf32>
    %14 = vector.shape_cast %13 : vector<1x128x128xf32> to vector<128x128xf32>
    %cst_13 = arith.constant dense<0.000000e+00> : vector<2x128xf32>
    %15 = tpu.matmul %9, %14, %cst_13 {dimension_numbers = #tpu.dot_dimension_numbers<[1], [0], [0], [1], [0, 0, 1, 1], [], []>} : vector<2x128xf32>, vector<128x128xf32>, vector<2x128xf32> -> vector<2x128xf32>
    %16 = arith.maximumf %12, %15 : vector<2x128xf32>
    %c3 = arith.constant 3 : index
    %c0_14 = arith.constant 0 : index
    %c0_15 = arith.constant 0 : index
    %17 = vector.load %arg1[%c3, %c0_14, %c0_15] : memref<18x128x128xf32, #tpu.memory_space<vmem>>, vector<1x128x128xf32>
    %18 = vector.shape_cast %17 : vector<1x128x128xf32> to vector<128x128xf32>
    %cst_16 = arith.constant dense<0.000000e+00> : vector<2x128xf32>
    %19 = tpu.matmul %16, %18, %cst_16 {dimension_numbers = #tpu.dot_dimension_numbers<[1], [0], [0], [1], [0, 0, 1, 1], [], []>} : vector<2x128xf32>, vector<128x128xf32>, vector<2x128xf32> -> vector<2x128xf32>
    %c1_17 = arith.constant 1 : index
    %c0_18 = arith.constant 0 : index
    %c0_19 = arith.constant 0 : index
    %20 = vector.load %arg2[%c1_17, %c0_18, %c0_19] : memref<16x1x128xf32, #tpu.memory_space<vmem>>, vector<1x1x128xf32>
    %21 = vector.shape_cast %20 : vector<1x1x128xf32> to vector<1x128xf32>
    %22 = vector.broadcast %21 : vector<1x128xf32> to vector<2x128xf32>
    %23 = arith.addf %19, %22 : vector<2x128xf32>
    %cst_20 = arith.constant 0.000000e+00 : f32
    %24 = vector.broadcast %cst_20 : f32 to vector<2x128xf32>
    %25 = arith.maximumf %23, %24 : vector<2x128xf32>
    %c4 = arith.constant 4 : index
    %c0_21 = arith.constant 0 : index
    %c0_22 = arith.constant 0 : index
    %26 = vector.load %arg1[%c4, %c0_21, %c0_22] : memref<18x128x128xf32, #tpu.memory_space<vmem>>, vector<1x128x128xf32>
    %27 = vector.shape_cast %26 : vector<1x128x128xf32> to vector<128x128xf32>
    %cst_23 = arith.constant dense<0.000000e+00> : vector<2x128xf32>
    %28 = tpu.matmul %25, %27, %cst_23 {dimension_numbers = #tpu.dot_dimension_numbers<[1], [0], [0], [1], [0, 0, 1, 1], [], []>} : vector<2x128xf32>, vector<128x128xf32>, vector<2x128xf32> -> vector<2x128xf32>
    %c2_24 = arith.constant 2 : index
    %c0_25 = arith.constant 0 : index
    %c0_26 = arith.constant 0 : index
    %29 = vector.load %arg2[%c2_24, %c0_25, %c0_26] : memref<16x1x128xf32, #tpu.memory_space<vmem>>, vector<1x1x128xf32>
    %30 = vector.shape_cast %29 : vector<1x1x128xf32> to vector<1x128xf32>
    %31 = vector.broadcast %30 : vector<1x128xf32> to vector<2x128xf32>
    %32 = arith.addf %28, %31 : vector<2x128xf32>
    %33 = arith.addf %32, %16 : vector<2x128xf32>
    %c3_27 = arith.constant 3 : index
    %c0_28 = arith.constant 0 : index
    %c0_29 = arith.constant 0 : index
    %34 = vector.load %arg2[%c3_27, %c0_28, %c0_29] : memref<16x1x128xf32, #tpu.memory_space<vmem>>, vector<1x1x128xf32>
    %35 = vector.shape_cast %34 : vector<1x1x128xf32> to vector<1x128xf32>
    %36 = vector.broadcast %35 : vector<1x128xf32> to vector<2x128xf32>
    %37 = arith.mulf %33, %36 : vector<2x128xf32>
    %c4_30 = arith.constant 4 : index
    %c0_31 = arith.constant 0 : index
    %c0_32 = arith.constant 0 : index
    %38 = vector.load %arg2[%c4_30, %c0_31, %c0_32] : memref<16x1x128xf32, #tpu.memory_space<vmem>>, vector<1x1x128xf32>
    %39 = vector.shape_cast %38 : vector<1x1x128xf32> to vector<1x128xf32>
    %40 = vector.broadcast %39 : vector<1x128xf32> to vector<2x128xf32>
    %41 = arith.addf %37, %40 : vector<2x128xf32>
    %cst_33 = arith.constant 0.000000e+00 : f32
    %42 = vector.broadcast %cst_33 : f32 to vector<2x128xf32>
    %43 = arith.maximumf %41, %42 : vector<2x128xf32>
    %c5 = arith.constant 5 : index
    %c0_34 = arith.constant 0 : index
    %c0_35 = arith.constant 0 : index
    %44 = vector.load %arg1[%c5, %c0_34, %c0_35] : memref<18x128x128xf32, #tpu.memory_space<vmem>>, vector<1x128x128xf32>
    %45 = vector.shape_cast %44 : vector<1x128x128xf32> to vector<128x128xf32>
    %cst_36 = arith.constant dense<0.000000e+00> : vector<2x128xf32>
    %46 = tpu.matmul %43, %45, %cst_36 {dimension_numbers = #tpu.dot_dimension_numbers<[1], [0], [0], [1], [0, 0, 1, 1], [], []>} : vector<2x128xf32>, vector<128x128xf32>, vector<2x128xf32> -> vector<2x128xf32>
    %c5_37 = arith.constant 5 : index
    %c0_38 = arith.constant 0 : index
    %c0_39 = arith.constant 0 : index
    %47 = vector.load %arg2[%c5_37, %c0_38, %c0_39] : memref<16x1x128xf32, #tpu.memory_space<vmem>>, vector<1x1x128xf32>
    %48 = vector.shape_cast %47 : vector<1x1x128xf32> to vector<1x128xf32>
    %49 = vector.broadcast %48 : vector<1x128xf32> to vector<2x128xf32>
    %50 = arith.addf %46, %49 : vector<2x128xf32>
    %cst_40 = arith.constant 0.000000e+00 : f32
    %51 = vector.broadcast %cst_40 : f32 to vector<2x128xf32>
    %52 = arith.maximumf %50, %51 : vector<2x128xf32>
    %c6 = arith.constant 6 : index
    %c0_41 = arith.constant 0 : index
    %c0_42 = arith.constant 0 : index
    %53 = vector.load %arg1[%c6, %c0_41, %c0_42] : memref<18x128x128xf32, #tpu.memory_space<vmem>>, vector<1x128x128xf32>
    %54 = vector.shape_cast %53 : vector<1x128x128xf32> to vector<128x128xf32>
    %cst_43 = arith.constant dense<0.000000e+00> : vector<2x128xf32>
    %55 = tpu.matmul %52, %54, %cst_43 {dimension_numbers = #tpu.dot_dimension_numbers<[1], [0], [0], [1], [0, 0, 1, 1], [], []>} : vector<2x128xf32>, vector<128x128xf32>, vector<2x128xf32> -> vector<2x128xf32>
    %c6_44 = arith.constant 6 : index
    %c0_45 = arith.constant 0 : index
    %c0_46 = arith.constant 0 : index
    %56 = vector.load %arg2[%c6_44, %c0_45, %c0_46] : memref<16x1x128xf32, #tpu.memory_space<vmem>>, vector<1x1x128xf32>
    %57 = vector.shape_cast %56 : vector<1x1x128xf32> to vector<1x128xf32>
    %58 = vector.broadcast %57 : vector<1x128xf32> to vector<2x128xf32>
    %59 = arith.addf %55, %58 : vector<2x128xf32>
    %c7 = arith.constant 7 : index
    %c0_47 = arith.constant 0 : index
    %c0_48 = arith.constant 0 : index
    %60 = vector.load %arg1[%c7, %c0_47, %c0_48] : memref<18x128x128xf32, #tpu.memory_space<vmem>>, vector<1x128x128xf32>
    %61 = vector.shape_cast %60 : vector<1x128x128xf32> to vector<128x128xf32>
    %cst_49 = arith.constant dense<0.000000e+00> : vector<2x128xf32>
    %62 = tpu.matmul %33, %61, %cst_49 {dimension_numbers = #tpu.dot_dimension_numbers<[1], [0], [0], [1], [0, 0, 1, 1], [], []>} : vector<2x128xf32>, vector<128x128xf32>, vector<2x128xf32> -> vector<2x128xf32>
    %c8 = arith.constant 8 : index
    %c0_50 = arith.constant 0 : index
    %c0_51 = arith.constant 0 : index
    %63 = vector.load %arg1[%c8, %c0_50, %c0_51] : memref<18x128x128xf32, #tpu.memory_space<vmem>>, vector<1x128x128xf32>
    %64 = vector.shape_cast %63 : vector<1x128x128xf32> to vector<128x128xf32>
    %cst_52 = arith.constant dense<0.000000e+00> : vector<2x128xf32>
    %65 = tpu.matmul %33, %64, %cst_52 {dimension_numbers = #tpu.dot_dimension_numbers<[1], [0], [0], [1], [0, 0, 1, 1], [], []>} : vector<2x128xf32>, vector<128x128xf32>, vector<2x128xf32> -> vector<2x128xf32>
    %66 = arith.maximumf %62, %65 : vector<2x128xf32>
    %67 = arith.addf %59, %66 : vector<2x128xf32>
    %c7_53 = arith.constant 7 : index
    %c0_54 = arith.constant 0 : index
    %c0_55 = arith.constant 0 : index
    %68 = vector.load %arg2[%c7_53, %c0_54, %c0_55] : memref<16x1x128xf32, #tpu.memory_space<vmem>>, vector<1x1x128xf32>
    %69 = vector.shape_cast %68 : vector<1x1x128xf32> to vector<1x128xf32>
    %70 = vector.broadcast %69 : vector<1x128xf32> to vector<2x128xf32>
    %71 = arith.mulf %67, %70 : vector<2x128xf32>
    %c8_56 = arith.constant 8 : index
    %c0_57 = arith.constant 0 : index
    %c0_58 = arith.constant 0 : index
    %72 = vector.load %arg2[%c8_56, %c0_57, %c0_58] : memref<16x1x128xf32, #tpu.memory_space<vmem>>, vector<1x1x128xf32>
    %73 = vector.shape_cast %72 : vector<1x1x128xf32> to vector<1x128xf32>
    %74 = vector.broadcast %73 : vector<1x128xf32> to vector<2x128xf32>
    %75 = arith.addf %71, %74 : vector<2x128xf32>
    %cst_59 = arith.constant 0.000000e+00 : f32
    %76 = vector.broadcast %cst_59 : f32 to vector<2x128xf32>
    %77 = arith.maximumf %75, %76 : vector<2x128xf32>
    %c9 = arith.constant 9 : index
    %c0_60 = arith.constant 0 : index
    %c0_61 = arith.constant 0 : index
    %78 = vector.load %arg1[%c9, %c0_60, %c0_61] : memref<18x128x128xf32, #tpu.memory_space<vmem>>, vector<1x128x128xf32>
    %79 = vector.shape_cast %78 : vector<1x128x128xf32> to vector<128x128xf32>
    %cst_62 = arith.constant dense<0.000000e+00> : vector<2x128xf32>
    %80 = tpu.matmul %77, %79, %cst_62 {dimension_numbers = #tpu.dot_dimension_numbers<[1], [0], [0], [1], [0, 0, 1, 1], [], []>} : vector<2x128xf32>, vector<128x128xf32>, vector<2x128xf32> -> vector<2x128xf32>
    %c9_63 = arith.constant 9 : index
    %c0_64 = arith.constant 0 : index
    %c0_65 = arith.constant 0 : index
    %81 = vector.load %arg2[%c9_63, %c0_64, %c0_65] : memref<16x1x128xf32, #tpu.memory_space<vmem>>, vector<1x1x128xf32>
    %82 = vector.shape_cast %81 : vector<1x1x128xf32> to vector<1x128xf32>
    %83 = vector.broadcast %82 : vector<1x128xf32> to vector<2x128xf32>
    %84 = arith.addf %80, %83 : vector<2x128xf32>
    %cst_66 = arith.constant 0.000000e+00 : f32
    %85 = vector.broadcast %cst_66 : f32 to vector<2x128xf32>
    %86 = arith.maximumf %84, %85 : vector<2x128xf32>
    %c10 = arith.constant 10 : index
    %c0_67 = arith.constant 0 : index
    %c0_68 = arith.constant 0 : index
    %87 = vector.load %arg1[%c10, %c0_67, %c0_68] : memref<18x128x128xf32, #tpu.memory_space<vmem>>, vector<1x128x128xf32>
    %88 = vector.shape_cast %87 : vector<1x128x128xf32> to vector<128x128xf32>
    %cst_69 = arith.constant dense<0.000000e+00> : vector<2x128xf32>
    %89 = tpu.matmul %86, %88, %cst_69 {dimension_numbers = #tpu.dot_dimension_numbers<[1], [0], [0], [1], [0, 0, 1, 1], [], []>} : vector<2x128xf32>, vector<128x128xf32>, vector<2x128xf32> -> vector<2x128xf32>
    %c10_70 = arith.constant 10 : index
    %c0_71 = arith.constant 0 : index
    %c0_72 = arith.constant 0 : index
    %90 = vector.load %arg2[%c10_70, %c0_71, %c0_72] : memref<16x1x128xf32, #tpu.memory_space<vmem>>, vector<1x1x128xf32>
    %91 = vector.shape_cast %90 : vector<1x1x128xf32> to vector<1x128xf32>
    %92 = vector.broadcast %91 : vector<1x128xf32> to vector<2x128xf32>
    %93 = arith.addf %89, %92 : vector<2x128xf32>
    %c11 = arith.constant 11 : index
    %c0_73 = arith.constant 0 : index
    %c0_74 = arith.constant 0 : index
    %94 = vector.load %arg1[%c11, %c0_73, %c0_74] : memref<18x128x128xf32, #tpu.memory_space<vmem>>, vector<1x128x128xf32>
    %95 = vector.shape_cast %94 : vector<1x128x128xf32> to vector<128x128xf32>
    %cst_75 = arith.constant dense<0.000000e+00> : vector<2x128xf32>
    %96 = tpu.matmul %67, %95, %cst_75 {dimension_numbers = #tpu.dot_dimension_numbers<[1], [0], [0], [1], [0, 0, 1, 1], [], []>} : vector<2x128xf32>, vector<128x128xf32>, vector<2x128xf32> -> vector<2x128xf32>
    %97 = arith.addf %93, %96 : vector<2x128xf32>
    %c11_76 = arith.constant 11 : index
    %c0_77 = arith.constant 0 : index
    %c0_78 = arith.constant 0 : index
    %98 = vector.load %arg2[%c11_76, %c0_77, %c0_78] : memref<16x1x128xf32, #tpu.memory_space<vmem>>, vector<1x1x128xf32>
    %99 = vector.shape_cast %98 : vector<1x1x128xf32> to vector<1x128xf32>
    %100 = vector.broadcast %99 : vector<1x128xf32> to vector<2x128xf32>
    %101 = arith.mulf %97, %100 : vector<2x128xf32>
    %c12 = arith.constant 12 : index
    %c0_79 = arith.constant 0 : index
    %c0_80 = arith.constant 0 : index
    %102 = vector.load %arg2[%c12, %c0_79, %c0_80] : memref<16x1x128xf32, #tpu.memory_space<vmem>>, vector<1x1x128xf32>
    %103 = vector.shape_cast %102 : vector<1x1x128xf32> to vector<1x128xf32>
    %104 = vector.broadcast %103 : vector<1x128xf32> to vector<2x128xf32>
    %105 = arith.addf %101, %104 : vector<2x128xf32>
    %cst_81 = arith.constant 0.000000e+00 : f32
    %106 = vector.broadcast %cst_81 : f32 to vector<2x128xf32>
    %107 = arith.maximumf %105, %106 : vector<2x128xf32>
    %c12_82 = arith.constant 12 : index
    %c0_83 = arith.constant 0 : index
    %c0_84 = arith.constant 0 : index
    %108 = vector.load %arg1[%c12_82, %c0_83, %c0_84] : memref<18x128x128xf32, #tpu.memory_space<vmem>>, vector<1x128x128xf32>
    %109 = vector.shape_cast %108 : vector<1x128x128xf32> to vector<128x128xf32>
    %cst_85 = arith.constant dense<0.000000e+00> : vector<2x128xf32>
    %110 = tpu.matmul %107, %109, %cst_85 {dimension_numbers = #tpu.dot_dimension_numbers<[1], [0], [0], [1], [0, 0, 1, 1], [], []>} : vector<2x128xf32>, vector<128x128xf32>, vector<2x128xf32> -> vector<2x128xf32>
    %c13 = arith.constant 13 : index
    %c0_86 = arith.constant 0 : index
    %c0_87 = arith.constant 0 : index
    %111 = vector.load %arg2[%c13, %c0_86, %c0_87] : memref<16x1x128xf32, #tpu.memory_space<vmem>>, vector<1x1x128xf32>
    %112 = vector.shape_cast %111 : vector<1x1x128xf32> to vector<1x128xf32>
    %113 = vector.broadcast %112 : vector<1x128xf32> to vector<2x128xf32>
    %114 = arith.addf %110, %113 : vector<2x128xf32>
    %cst_88 = arith.constant 0.000000e+00 : f32
    %115 = vector.broadcast %cst_88 : f32 to vector<2x128xf32>
    %116 = arith.maximumf %114, %115 : vector<2x128xf32>
    %c13_89 = arith.constant 13 : index
    %c0_90 = arith.constant 0 : index
    %c0_91 = arith.constant 0 : index
    %117 = vector.load %arg1[%c13_89, %c0_90, %c0_91] : memref<18x128x128xf32, #tpu.memory_space<vmem>>, vector<1x128x128xf32>
    %118 = vector.shape_cast %117 : vector<1x128x128xf32> to vector<128x128xf32>
    %cst_92 = arith.constant dense<0.000000e+00> : vector<2x128xf32>
    %119 = tpu.matmul %116, %118, %cst_92 {dimension_numbers = #tpu.dot_dimension_numbers<[1], [0], [0], [1], [0, 0, 1, 1], [], []>} : vector<2x128xf32>, vector<128x128xf32>, vector<2x128xf32> -> vector<2x128xf32>
    %c14 = arith.constant 14 : index
    %c0_93 = arith.constant 0 : index
    %c0_94 = arith.constant 0 : index
    %120 = vector.load %arg2[%c14, %c0_93, %c0_94] : memref<16x1x128xf32, #tpu.memory_space<vmem>>, vector<1x1x128xf32>
    %121 = vector.shape_cast %120 : vector<1x1x128xf32> to vector<1x128xf32>
    %122 = vector.broadcast %121 : vector<1x128xf32> to vector<2x128xf32>
    %123 = arith.addf %119, %122 : vector<2x128xf32>
    %c14_95 = arith.constant 14 : index
    %c0_96 = arith.constant 0 : index
    %c0_97 = arith.constant 0 : index
    %124 = vector.load %arg1[%c14_95, %c0_96, %c0_97] : memref<18x128x128xf32, #tpu.memory_space<vmem>>, vector<1x128x128xf32>
    %125 = vector.shape_cast %124 : vector<1x128x128xf32> to vector<128x128xf32>
    %cst_98 = arith.constant dense<0.000000e+00> : vector<2x128xf32>
    %126 = tpu.matmul %97, %125, %cst_98 {dimension_numbers = #tpu.dot_dimension_numbers<[1], [0], [0], [1], [0, 0, 1, 1], [], []>} : vector<2x128xf32>, vector<128x128xf32>, vector<2x128xf32> -> vector<2x128xf32>
    %c15 = arith.constant 15 : index
    %c0_99 = arith.constant 0 : index
    %c0_100 = arith.constant 0 : index
    %127 = vector.load %arg1[%c15, %c0_99, %c0_100] : memref<18x128x128xf32, #tpu.memory_space<vmem>>, vector<1x128x128xf32>
    %128 = vector.shape_cast %127 : vector<1x128x128xf32> to vector<128x128xf32>
    %cst_101 = arith.constant dense<0.000000e+00> : vector<2x128xf32>
    %129 = tpu.matmul %97, %128, %cst_101 {dimension_numbers = #tpu.dot_dimension_numbers<[1], [0], [0], [1], [0, 0, 1, 1], [], []>} : vector<2x128xf32>, vector<128x128xf32>, vector<2x128xf32> -> vector<2x128xf32>
    %130 = arith.maximumf %126, %129 : vector<2x128xf32>
    %131 = arith.addf %123, %130 : vector<2x128xf32>
    %cst_102 = arith.constant 0.000000e+00 : f32
    %132 = vector.broadcast %cst_102 : f32 to vector<2x128xf32>
    %133 = arith.maximumf %131, %132 : vector<2x128xf32>
    %c16 = arith.constant 16 : index
    %c0_103 = arith.constant 0 : index
    %c0_104 = arith.constant 0 : index
    %134 = vector.load %arg1[%c16, %c0_103, %c0_104] : memref<18x128x128xf32, #tpu.memory_space<vmem>>, vector<1x128x128xf32>
    %135 = vector.shape_cast %134 : vector<1x128x128xf32> to vector<128x128xf32>
    %cst_105 = arith.constant dense<0.000000e+00> : vector<2x128xf32>
    %136 = tpu.matmul %133, %135, %cst_105 {dimension_numbers = #tpu.dot_dimension_numbers<[1], [0], [0], [1], [0, 0, 1, 1], [], []>} : vector<2x128xf32>, vector<128x128xf32>, vector<2x128xf32> -> vector<2x128xf32>
    %137 = vector.extract_strided_slice %136 {offsets = [0, 0], sizes = [2, 16], strides = [1, 1]} : vector<2x128xf32> to vector<2x16xf32>
    %c0_106 = arith.constant 0 : index
    %c0_107 = arith.constant 0 : index
    %138 = vector.load %arg4[%c0_106, %c0_107] : memref<2x16xf32, #tpu.memory_space<vmem>>, vector<2x16xf32>
    tpu.vector_store %arg4[%c0_106, %c0_107], %137 {strides = array<i32>} : memref<2x16xf32, #tpu.memory_space<vmem>>, vector<2x16xf32>,
    %c17 = arith.constant 17 : index
    %c0_108 = arith.constant 0 : index
    %c0_109 = arith.constant 0 : index
    %139 = vector.load %arg1[%c17, %c0_108, %c0_109] : memref<18x128x128xf32, #tpu.memory_space<vmem>>, vector<1x128x128xf32>
    %140 = vector.shape_cast %139 : vector<1x128x128xf32> to vector<128x128xf32>
    %cst_110 = arith.constant dense<0.000000e+00> : vector<2x128xf32>
    %141 = tpu.matmul %136, %140, %cst_110 {dimension_numbers = #tpu.dot_dimension_numbers<[1], [0], [0], [1], [0, 0, 1, 1], [], []>} : vector<2x128xf32>, vector<128x128xf32>, vector<2x128xf32> -> vector<2x128xf32>
    %c15_111 = arith.constant 15 : index
    %c0_112 = arith.constant 0 : index
    %c0_113 = arith.constant 0 : index
    %142 = vector.load %arg2[%c15_111, %c0_112, %c0_113] : memref<16x1x128xf32, #tpu.memory_space<vmem>>, vector<1x1x128xf32>
    %143 = vector.shape_cast %142 : vector<1x1x128xf32> to vector<1x128xf32>
    %144 = vector.broadcast %143 : vector<1x128xf32> to vector<2x128xf32>
    %145 = arith.addf %141, %144 : vector<2x128xf32>
    %146 = vector.extract_strided_slice %145 {offsets = [0, 0], sizes = [2, 5], strides = [1, 1]} : vector<2x128xf32> to vector<2x5xf32>
    %c0_114 = arith.constant 0 : index
    %c0_115 = arith.constant 0 : index
    %147 = vector.load %arg3[%c0_114, %c0_115] : memref<2x5xf32, #tpu.memory_space<vmem>>, vector<2x5xf32>
    tpu.vector_store %arg3[%c0_114, %c0_115], %146 {strides = array<i32>} : memref<2x5xf32, #tpu.memory_space<vmem>>, vector<2x5xf32>,
    return
  }
}

</mosaic_0001>

<bundles_post_ra>
// kernel: tpu_custom_call.1
= control target key start
LH: loop header
LB: loop body
LE: loop exit
PB: predicated region body
PF: predicated region fallthrough
CT: control target
= control target key end

     0   :  { %10 = vsyncpa [#allocation3], 0  ;;  %s3624_s0 = inlined_call_operand.hbm [shape: f32[2,128], index: 0, kind: input, shape index: {}]   ;;  %s3625_s1 = inlined_call_operand.hbm [shape: f32[18,128,128], index: 1, kind: input, shape index: {}]   ;;  %s3626_s2 = inlined_call_operand.hbm [shape: f32[16,1,128], index: 2, kind: input, shape index: {}]   ;;  %s3627_s3 = inlined_call_operand.hbm [shape: f32[2,5], index: 3, kind: output, shape index: {0}]   ;;  %s3628_s4 = inlined_call_operand.hbm [shape: f32[2,16], index: 4, kind: output, shape index: {1}]  }
   0x1   :  { %11 = vsyncpa [#allocation6], 0 }
   0x2   :  { %12 = vsyncpa [#allocation4], 0 }
   0x3   :  { %13 = vsyncpa [#allocation10], 0  ;;  %s3323_s15 = smov [#allocation5]   ;;  %s3205_s19 = scalar_lea.hbm %s3625_s1, 36864 }
   0x4   :  { %s29_s16 = sshll.u32 %s3323_s15, 4  ;;  %p3206_p0 = scmp.ne.s32.totalorder %s3625_s1, %s3205_s19  ;;  %s30_s16 = int_to_ptr.vmem [resolvable:$true] %s29_s16 }
   0x5   :  { %p3209_p1 = scmp.lt.u32.totalorder %s3205_s19, %s3625_s1 }
   0x7   :  { %p3211_p2 = pnand %p3209_p1, %p3206_p0 }
   0x9   :  { %3214 = shalt.err (!%p3211_p2)
}
   0xa   :  { %s3215_s24 = scalar_lea.vmem %s30_s16, 36864  ;;  %p3220_p4 = scmp.lt.s32.totalorder %s30_s16, %s30_s16 }
   0xb   :  { %p3216_p3 = scmp.ne.s32.totalorder %s30_s16, %s3215_s24  ;;  %p3221_p5 = scmp.lt.s32.totalorder %s3215_s24, %s3215_s24 }
   0xd   :  { %p3222_p6 = por %p3221_p5, %p3220_p4 }
   0xf   :  { %p3223_p7 = pnand %p3222_p6, %p3216_p3 }
  0x11   :  { %3226 = shalt.err (!%p3223_p7)
}
  0x12   :  { %s3324_s25 = smov 128   ;;  %s3325_s26 = smov 8  }
  0x13   :  { %35 = dma.hbm_to_vmem [thread:$0]  %s3625_s1, 36864, %s30_s16, [#allocation6], %s3324_s25, %s3324_s25, %s3325_s26  }
  0x14   :  { %s3326_s29 = smov [#allocation2]   ;;  %s3327_s5 = smov [#allocation7]  }
  0x15   :  { %s20_s30 = sshll.u32 %s3326_s29, 4  ;;  %s41_s6 = sshll.u32 %s3327_s5, 4  ;;  %s21_s30 = int_to_ptr.vmem [resolvable:$true] %s20_s30  ;;  %s42_s6 = int_to_ptr.vmem [resolvable:$true] %s41_s6 }
  0x16   :  { %s3227_s9 = scalar_lea.hbm %s3624_s0, 32 }
  0x17   :  { %p3228_p8 = scmp.ne.s32.totalorder %s3624_s0, %s3227_s9  ;;  %p3231_p9 = scmp.lt.u32.totalorder %s3227_s9, %s3624_s0 }
  0x19   :  { %p3233_p10 = pnand %p3231_p9, %p3228_p8 }
  0x1b   :  { %3236 = shalt.err (!%p3233_p10)
}
  0x1c   :  { %s3237_s1 = scalar_lea.vmem %s21_s30, 32  ;;  %p3242_p12 = scmp.lt.s32.totalorder %s21_s30, %s21_s30 }
  0x1d   :  { %p3238_p11 = scmp.ne.s32.totalorder %s21_s30, %s3237_s1  ;;  %p3243_p13 = scmp.lt.s32.totalorder %s3237_s1, %s3237_s1 }
  0x1f   :  { %p3244_p0 = por %p3243_p13, %p3242_p12 }
  0x21   :  { %p3245_p1 = pnand %p3244_p0, %p3238_p11 }
  0x23   :  { %3248 = shalt.err (!%p3245_p1)
}
  0x24   :  { %23 = dma.hbm_to_vmem [thread:$0]  %s3624_s0, 32, %s21_s30, [#allocation3]  }
  0x25   :  { %s3249_s18 = scalar_lea.hbm %s3626_s2, 256 }
  0x26   :  { %p3250_p2 = scmp.ne.s32.totalorder %s3626_s2, %s3249_s18  ;;  %p3253_p3 = scmp.lt.u32.totalorder %s3249_s18, %s3626_s2 }
  0x28   :  { %p3255_p4 = pnand %p3253_p3, %p3250_p2 }
  0x2a   :  { %3258 = shalt.err (!%p3255_p4)
}
  0x2b   :  { %s3259_s23 = scalar_lea.vmem %s42_s6, 256  ;;  %p3264_p6 = scmp.lt.s32.totalorder %s42_s6, %s42_s6 }
  0x2c   :  { %p3260_p5 = scmp.ne.s32.totalorder %s42_s6, %s3259_s23  ;;  %p3265_p7 = scmp.lt.s32.totalorder %s3259_s23, %s3259_s23 }
  0x2e   :  { %p3266_p8 = por %p3265_p7, %p3264_p6 }
  0x30   :  { %p3267_p9 = pnand %p3266_p8, %p3260_p5 }
  0x32   :  { %3270 = shalt.err (!%p3267_p9)
}
  0x33   :  { %s3328_s0 = smov 16   ;;  %s3329_s24 = smov 1  }
  0x34   :  { %47 = dma.hbm_to_vmem [thread:$0]  %s3626_s2, 256, %s42_s6, [#allocation6], %s3328_s0, %s3328_s0, %s3329_s24  }
  0x35   :  { %3315 = dma.done.wait [#allocation3], 32  }
  0x36   :  { %3316 = vsyncadd [#allocation3], 4294967264 }
  0x37   :  { %3317 = dma.done.wait [#allocation6], 37120  }
  0x38   :  { %3318 = vsyncadd [#allocation6], 4294930176  ;;  %v3330_v0 = vmov 0.0|0.0   ;;  %vm3331_vm0 = vmmov 0   ;;  %v3332_v1 = vmov 0.0   ;;  %v58_v2 = vld [vmem:[#allocation5] sm:$0xff] }
  0x39   :  { %2758 = vmatprep.subr.bf16.mxu0 %v3330_v0  ;;  %2160 = vmatprep.mubr.msk.f32.mxu0 %vm3331_vm0, %v3332_v1  ;;  %v59_v3 = vld [vmem:[#allocation5 + $0x8] sm:$0xff]  ;;  %v60_v4 = vld [vmem:[#allocation5 + $0x10] sm:$0xff]  ;;  %v61_v6 = vld [vmem:[#allocation5 + $0x18] sm:$0xff]  ;;  %vm1677_vm1 = vcmask 123904   ;;  %s3333_s2 = smov [#allocation9]  }
  0x3a   :  { %2782 = vmatprep.subr.bf16.mxu1 %v3330_v0  ;;  %2195 = vmatprep.mubr.msk.f32.mxu1 %vm3331_vm0, %v3332_v1  ;;  %v2759_v5 = vpack.c.bf16 %v59_v3, %v58_v2  ;;  %v2762_v7 = vpack.c.bf16 %v61_v6, %v60_v4  ;;  %v62_v8 = vld [vmem:[#allocation5 + $0x20] sm:$0xff]  ;;  %v63_v9 = vld [vmem:[#allocation5 + $0x28] sm:$0xff]  ;;  %v155_v14 = vld [vmem:[#allocation5 + $0x90] sm:$0xff]  ;;  %s1792_s27 = sshll.u32 %s3333_s2, 4  ;;  %s1793_s27 = int_to_ptr.vmem [resolvable:$true] %s1792_s27 }
  0x3b   :  { %v153_v10 = vld [vmem:[#allocation5 + $0x80] sm:$0xff]  ;;  %v154_v11 = vld [vmem:[#allocation5 + $0x88] sm:$0xff]  ;;  %v2765_v12 = vpack.c.bf16 %v63_v9, %v62_v8  ;;  %v156_v15 = vld [vmem:[#allocation5 + $0x98] sm:$0xff]  ;;  %s3271_s28 = scalar_lea.vmem %s1793_s27, 32  ;;  %p3276_p11 = scmp.lt.s32.totalorder %s1793_s27, %s1793_s27 }
  0x3c   :  { %2760 = vmatpush3.bf16.msra.mxu0 %v2759_v5  ;;  %v2783_v13 = vpack.c.bf16 %v154_v11, %v153_v10  ;;  %v64_v16 = vld [vmem:[#allocation5 + $0x30] sm:$0xff]  ;;  %v65_v17 = vld [vmem:[#allocation5 + $0x38] sm:$0xff]  ;;  %v2786_v18 = vpack.c.bf16 %v156_v15, %v155_v14  ;;  %v157_v19 = vld [vmem:[#allocation5 + $0xa0] sm:$0xff]  ;;  %p3272_p10 = scmp.ne.s32.totalorder %s1793_s27, %s3271_s28  ;;  %p3277_p12 = scmp.lt.s32.totalorder %s3271_s28, %s3271_s28 }
  0x3d   :  { %2761 = vmatprep.subr.bf16.mxu0 %v3330_v0  ;;  %v158_v20 = vld [vmem:[#allocation5 + $0xa8] sm:$0xff]  ;;  %v2768_v21 = vpack.c.bf16 %v65_v17, %v64_v16  ;;  %v66_v22 = vld [vmem:[#allocation5 + $0x40] sm:$0xff]  ;;  %v159_v25 = vld [vmem:[#allocation5 + $0xb0] sm:$0xff] }
  0x3e   :  { %2784 = vmatpush3.bf16.msra.mxu1 %v2783_v13  ;;  %v67_v23 = vld [vmem:[#allocation5 + $0x48] sm:$0xff]  ;;  %v2789_v24 = vpack.c.bf16 %v158_v20, %v157_v19  ;;  %v160_v26 = vld [vmem:[#allocation5 + $0xb8] sm:$0xff]  ;;  %v68_v28 = vld [vmem:[#allocation5 + $0x50] sm:$0xff]  ;;  %p3278_p13 = por %p3277_p12, %p3276_p11 }
  0x3f   :  { %2785 = vmatprep.subr.bf16.mxu1 %v3330_v0  ;;  %v2771_v27 = vpack.c.bf16 %v67_v23, %v66_v22  ;;  %v69_v29 = vld [vmem:[#allocation5 + $0x58] sm:$0xff]  ;;  %v2792_v30 = vpack.c.bf16 %v160_v26, %v159_v25  ;;  %v161_v31 = vld [vmem:[#allocation5 + $0xc0] sm:$0xff]  ;;  %v162_v32 = vld [vmem:[#allocation5 + $0xc8] sm:$0xff] }
  0x40   :  { %2763 = vmatpush3.bf16.msra.mxu0 %v2762_v7  ;;  %v2774_v33 = vpack.c.bf16 %v69_v29, %v68_v28  ;;  %v70_v34 = vld [vmem:[#allocation5 + $0x60] sm:$0xff]  ;;  %v71_v35 = vld [vmem:[#allocation5 + $0x68] sm:$0xff]  ;;  %v2795_v36 = vpack.c.bf16 %v162_v32, %v161_v31  ;;  %v163_v37 = vld [vmem:[#allocation5 + $0xd0] sm:$0xff]  ;;  %p3279_p0 = pnand %p3278_p13, %p3272_p10 }
  0x41   :  { %2764 = vmatprep.subr.bf16.mxu0 %v3330_v0  ;;  %v164_v38 = vld [vmem:[#allocation5 + $0xd8] sm:$0xff]  ;;  %v2777_v39 = vpack.c.bf16 %v71_v35, %v70_v34  ;;  %v72_v40 = vld [vmem:[#allocation5 + $0x70] sm:$0xff]  ;;  %v165_v43 = vld [vmem:[#allocation5 + $0xe0] sm:$0xff] }
  0x42   :  { %2787 = vmatpush3.bf16.msra.mxu1 %v2786_v18  ;;  %v73_v41 = vld [vmem:[#allocation5 + $0x78] sm:$0xff]  ;;  %v2798_v42 = vpack.c.bf16 %v164_v38, %v163_v37  ;;  %v166_v44 = vld [vmem:[#allocation5 + $0xe8] sm:$0xff]  ;;  %v240_v46 = vld [vmem:[#allocation5 + $0x100] sm:$0xff] }
  0x43   :  { %2788 = vmatprep.subr.bf16.mxu1 %v3330_v0  ;;  %v2780_v45 = vpack.c.bf16 %v73_v41, %v72_v40  ;;  %v241_v47 = vld [vmem:[#allocation5 + $0x108] sm:$0xff]  ;;  %v2801_v48 = vpack.c.bf16 %v166_v44, %v165_v43  ;;  %v57_v49 = vld [vmem:[#allocation2] sm:$0x3]  ;;  %v242_v51 = vld [vmem:[#allocation5 + $0x110] sm:$0xff] }
  0x44   :  { %2766 = vmatpush3.bf16.msra.mxu0 %v2765_v12  ;;  %v2807_v50 = vpack.c.bf16 %v241_v47, %v240_v46  ;;  %v243_v52 = vld [vmem:[#allocation5 + $0x118] sm:$0xff]  ;;  %v244_v54 = vld [vmem:[#allocation5 + $0x120] sm:$0xff]  ;;  %v245_v55 = vld [vmem:[#allocation5 + $0x128] sm:$0xff] }
  0x45   :  { %2767 = vmatprep.subr.bf16.mxu0 %v3330_v0  ;;  %v2810_v53 = vpack.c.bf16 %v243_v52, %v242_v51  ;;  %v2813_v56 = vpack.c.bf16 %v245_v55, %v244_v54  ;;  %v246_v57 = vld [vmem:[#allocation5 + $0x130] sm:$0xff]  ;;  %v247_v58 = vld [vmem:[#allocation5 + $0x138] sm:$0xff]  ;;  %v248_v60 = vld [vmem:[#allocation5 + $0x140] sm:$0xff] }
  0x46   :  { %2790 = vmatpush3.bf16.msra.mxu1 %v2789_v24  ;;  %v2816_v59 = vpack.c.bf16 %v247_v58, %v246_v57  ;;  %v249_v61 = vld [vmem:[#allocation5 + $0x148] sm:$0xff]  ;;  %v250_v63 = vld [vmem:[#allocation5 + $0x150] sm:$0xff]  ;;  %v251_v2 = vld [vmem:[#allocation5 + $0x158] sm:$0xff] }
  0x47   :  { %2791 = vmatprep.subr.bf16.mxu1 %v3330_v0  ;;  %v2819_v62 = vpack.c.bf16 %v249_v61, %v248_v60  ;;  %v2822_v3 = vpack.c.bf16 %v251_v2, %v250_v63  ;;  %v252_v4 = vld [vmem:[#allocation5 + $0x160] sm:$0xff]  ;;  %v253_v5 = vld [vmem:[#allocation5 + $0x168] sm:$0xff]  ;;  %v167_v7 = vld [vmem:[#allocation5 + $0xf0] sm:$0xff] }
  0x48   :  { %2769 = vmatpush3.bf16.msra.mxu0 %v2768_v21  ;;  %v2825_v6 = vpack.c.bf16 %v253_v5, %v252_v4  ;;  %v168_v8 = vld [vmem:[#allocation5 + $0xf8] sm:$0xff]  ;;  %v254_v9 = vld [vmem:[#allocation5 + $0x170] sm:$0xff]  ;;  %v1806_v13 = vld [vmem:[#allocation7] ss:$0 sm:$0xff] }
  0x49   :  { %2770 = vmatprep.subr.bf16.mxu0 %v3330_v0  ;;  %v2804_v10 = vpack.c.bf16 %v168_v8, %v167_v7  ;;  %v255_v11 = vld [vmem:[#allocation5 + $0x178] sm:$0xff]  ;;  %v328_v14 = vld [vmem:[#allocation5 + $0x180] sm:$0xff]  ;;  %v329_v15 = vld [vmem:[#allocation5 + $0x188] sm:$0xff] }
  0x4a   :  { %2793 = vmatpush3.bf16.msra.mxu1 %v2792_v30  ;;  %v2828_v12 = vpack.c.bf16 %v255_v11, %v254_v9  ;;  %v2831_v19 = vpack.c.bf16 %v329_v15, %v328_v14  ;;  %v330_v21 = vld [vmem:[#allocation5 + $0x190] sm:$0xff]  ;;  %v331_v22 = vld [vmem:[#allocation5 + $0x198] sm:$0xff]  ;;  %v332_v24 = vld [vmem:[#allocation5 + $0x1a0] sm:$0xff] }
  0x4b   :  { %2794 = vmatprep.subr.bf16.mxu1 %v3330_v0  ;;  %v2834_v23 = vpack.c.bf16 %v331_v22, %v330_v21  ;;  %v333_v25 = vld [vmem:[#allocation5 + $0x1a8] sm:$0xff]  ;;  %v335_v28 = vld [vmem:[#allocation5 + $0x1b8] sm:$0xff]  ;;  %v336_v30 = vld [vmem:[#allocation5 + $0x1c0] sm:$0xff] }
  0x4c   :  { %2772 = vmatpush3.bf16.msra.mxu0 %v2771_v27  ;;  %v2837_v26 = vpack.c.bf16 %v333_v25, %v332_v24  ;;  %v334_v27 = vld [vmem:[#allocation5 + $0x1b0] sm:$0xff]  ;;  %v337_v31 = vld [vmem:[#allocation5 + $0x1c8] sm:$0xff]  ;;  %v339_v34 = vld [vmem:[#allocation5 + $0x1d8] sm:$0xff] }
  0x4d   :  { %2773 = vmatprep.subr.bf16.mxu0 %v3330_v0  ;;  %v2840_v29 = vpack.c.bf16 %v335_v28, %v334_v27  ;;  %v2843_v32 = vpack.c.bf16 %v337_v31, %v336_v30  ;;  %v341_v37 = vld [vmem:[#allocation5 + $0x1e8] sm:$0xff]  ;;  %v343_v40 = vld [vmem:[#allocation5 + $0x1f8] sm:$0xff]  ;;  %v426_v44 = vld [vmem:[#allocation5 + $0x210] sm:$0xff] }
  0x4e   :  { %2796 = vmatpush3.bf16.msra.mxu1 %v2795_v36  ;;  %v340_v36 = vld [vmem:[#allocation5 + $0x1e0] sm:$0xff]  ;;  %v425_v43 = vld [vmem:[#allocation5 + $0x208] sm:$0xff]  ;;  %v427_v46 = vld [vmem:[#allocation5 + $0x218] sm:$0xff] }
  0x4f   :  { %2797 = vmatprep.subr.bf16.mxu1 %v3330_v0  ;;  %v2849_v38 = vpack.c.bf16 %v341_v37, %v340_v36  ;;  %v2858_v47 = vpack.c.bf16 %v427_v46, %v426_v44  ;;  %v430_v51 = vld [vmem:[#allocation5 + $0x230] sm:$0xff]  ;;  %v431_v52 = vld [vmem:[#allocation5 + $0x238] sm:$0xff]  ;;  %v432_v54 = vld [vmem:[#allocation5 + $0x240] sm:$0xff] }
  0x50   :  { %2775 = vmatpush3.bf16.msra.mxu0 %v2774_v33  ;;  %v338_v33 = vld [vmem:[#allocation5 + $0x1d0] sm:$0xff]  ;;  %v433_v55 = vld [vmem:[#allocation5 + $0x248] sm:$0xff]  ;;  %v435_v58 = vld [vmem:[#allocation5 + $0x258] sm:$0xff] }
  0x51   :  { %2776 = vmatprep.subr.bf16.mxu0 %v3330_v0  ;;  %v2846_v35 = vpack.c.bf16 %v339_v34, %v338_v33  ;;  %v434_v57 = vld [vmem:[#allocation5 + $0x250] sm:$0xff]  ;;  %v436_v60 = vld [vmem:[#allocation5 + $0x260] sm:$0xff]  ;;  %v437_v61 = vld [vmem:[#allocation5 + $0x268] sm:$0xff] }
  0x52   :  { %2799 = vmatpush3.bf16.msra.mxu1 %v2798_v42  ;;  %v424_v42 = vld [vmem:[#allocation5 + $0x200] sm:$0xff]  ;;  %v439_v7 = vld [vmem:[#allocation5 + $0x278] sm:$0xff]  ;;  %v541_v11 = vld [vmem:[#allocation5 + $0x290] sm:$0xff] }
  0x53   :  { %2800 = vmatprep.subr.bf16.mxu1 %v3330_v0  ;;  %v539_v9 = vld [vmem:[#allocation5 + $0x280] sm:$0xff]  ;;  %v548_v22 = vld [vmem:[#allocation5 + $0x2c8] sm:$0xff]  ;;  %v549_v24 = vld [vmem:[#allocation5 + $0x2d0] sm:$0xff] }
  0x54   :  { %2778 = vmatpush3.bf16.msra.mxu0 %v2777_v39  ;;  %v342_v39 = vld [vmem:[#allocation5 + $0x1f0] sm:$0xff]  ;;  %v543_v15 = vld [vmem:[#allocation5 + $0x2a0] sm:$0xff]  ;;  %v550_v25 = vld [vmem:[#allocation5 + $0x2d8] sm:$0xff] }
  0x55   :  { %2779 = vmatprep.subr.bf16.mxu0 %v3330_v0  ;;  %v2852_v41 = vpack.c.bf16 %v343_v40, %v342_v39  ;;  %v547_v21 = vld [vmem:[#allocation5 + $0x2c0] sm:$0xff]  ;;  %v552_v33 = vld [vmem:[#allocation5 + $0x2e8] sm:$0xff]  ;;  %v554_v36 = vld [vmem:[#allocation5 + $0x2f8] sm:$0xff] }
  0x56   :  { %2802 = vmatpush3.bf16.msra.mxu1 %v2801_v48  ;;  %v428_v48 = vld [vmem:[#allocation5 + $0x220] sm:$0xff]  ;;  %v636_v39 = vld [vmem:[#allocation5 + $0x308] sm:$0xff]  ;;  %v637_v40 = vld [vmem:[#allocation5 + $0x310] sm:$0xff] }
  0x57   :  { %2803 = vmatprep.subr.bf16.mxu1 %v3330_v0  ;;  %v1807_v27 = vld [vmem:[#allocation7 + $0x1] ss:$0 sm:$0xff] }
  0x58   :  { %2781 = vmatpush3.bf16.msra.mxu0 %v2780_v45  ;;  %v2855_v45 = vpack.c.bf16 %v425_v43, %v424_v42  ;;  %v638_v42 = vld [vmem:[#allocation5 + $0x318] sm:$0xff]  ;;  %v639_v44 = vld [vmem:[#allocation5 + $0x320] sm:$0xff] }
  0x59   :  { %2806 = vmatprep.subr.bf16.mxu0 %v3330_v0  ;;  %v2906_v43 = vpack.c.bf16 %v638_v42, %v637_v40  ;;  %v819_v42 = vld [vmem:[#allocation5 + $0x410] sm:$0xff] }
  0x5a   :  { %2805 = vmatpush3.bf16.msra.mxu1 %v2804_v10  ;;  %v540_v10 = vld [vmem:[#allocation5 + $0x288] sm:$0xff] }
  0x5b   :  { %2161 = vmatmul.mubr.f32.vlgmr.msra.gmra.mrb[0].mxu0 %v57_v49  ;;  %2830 = vmatprep.subr.bf16.mxu1 %v3330_v0  ;;  %v429_v49 = vld [vmem:[#allocation5 + $0x228] sm:$0xff] }
  0x5c   :  { %2808 = vmatpush3.bf16.msra.mxu0 %v2807_v50  ;;  %2230 = vmatprep.mubr.msk.f32.mxu0 %vm3331_vm0, %v3332_v1  ;;  %v2861_v50 = vpack.c.bf16 %v429_v49, %v428_v48  ;;  %v642_v48 = vld [vmem:[#allocation5 + $0x338] sm:$0xff] }
  0x5d   :  { %2809 = vmatprep.subr.bf16.mxu0 %v3330_v0 }
  0x60   :  { %2811 = vmatpush3.bf16.msra.mxu0 %v2810_v53  ;;  %v2864_v53 = vpack.c.bf16 %v431_v52, %v430_v51  ;;  %v644_v51 = vld [vmem:[#allocation5 + $0x348] sm:$0xff] }
  0x61   :  { %2812 = vmatprep.subr.bf16.mxu0 %v3330_v0 }
  0x64   :  { %2814 = vmatpush3.bf16.msra.mxu0 %v2813_v56  ;;  %v2867_v56 = vpack.c.bf16 %v433_v55, %v432_v54  ;;  %v646_v54 = vld [vmem:[#allocation5 + $0x358] sm:$0xff] }
  0x65   :  { %2815 = vmatprep.subr.bf16.mxu0 %v3330_v0 }
  0x68   :  { %2817 = vmatpush3.bf16.msra.mxu0 %v2816_v59  ;;  %v2870_v59 = vpack.c.bf16 %v435_v58, %v434_v57  ;;  %v648_v57 = vld [vmem:[#allocation5 + $0x368] sm:$0xff] }
  0x69   :  { %2818 = vmatprep.subr.bf16.mxu0 %v3330_v0 }
  0x6c   :  { %2820 = vmatpush3.bf16.msra.mxu0 %v2819_v62  ;;  %v2873_v62 = vpack.c.bf16 %v437_v61, %v436_v60 }
  0x6d   :  { %2821 = vmatprep.subr.bf16.mxu0 %v3330_v0 }
  0x70   :  { %2823 = vmatpush3.bf16.msra.mxu0 %v2822_v3 }
  0x71   :  { %2824 = vmatprep.subr.bf16.mxu0 %v3330_v0 }
  0x74   :  { %2826 = vmatpush3.bf16.msra.mxu0 %v2825_v6  ;;  %v438_v6 = vld [vmem:[#allocation5 + $0x270] sm:$0xff] }
  0x75   :  { %2827 = vmatprep.subr.bf16.mxu0 %v3330_v0  ;;  %v2876_v8 = vpack.c.bf16 %v439_v7, %v438_v6  ;;  %v730_v6 = vld [vmem:[#allocation5 + $0x380] sm:$0xff]  ;;  %v731_v7 = vld [vmem:[#allocation5 + $0x388] sm:$0xff] }
  0x78   :  { %2829 = vmatpush3.bf16.msra.mxu0 %v2828_v12  ;;  %v2879_v12 = vpack.c.bf16 %v540_v10, %v539_v9  ;;  %v2927_v9 = vpack.c.bf16 %v731_v7, %v730_v6  ;;  %v926_v6 = vld [vmem:[#allocation5 + $0x488] sm:$0xff]  ;;  %v927_v7 = vld [vmem:[#allocation5 + $0x490] sm:$0xff] }
  0x79   :  { %2854 = vmatprep.subr.bf16.mxu0 %v3330_v0 }
 0x12e   :  { %v147_v16 = vpop.f32.mrb[0].mxu0 }
 0x12f   :  { %v148_v17 = vadd.f32 %v1806_v13, %v147_v16  ;;  %v2162_v18 = vpop.f32.mrb[1].mxu0  ;;  %v542_v13 = vld [vmem:[#allocation5 + $0x298] sm:$0xff]  ;;  %v544_v16 = vld [vmem:[#allocation5 + $0x2a8] sm:$0xff] }
 0x130   :  { %v2882_v14 = vpack.c.bf16 %v542_v13, %v541_v11  ;;  %v545_v18 = vld [vmem:[#allocation5 + $0x2b0] sm:$0xff] }
 0x131   :  { %v151_v20 = vmax.f32 %v148_v17, 0.0  ;;  %v2885_v17 = vpack.c.bf16 %v544_v16, %v543_v15  ;;  %v732_v11 = vld [vmem:[#allocation5 + $0x390] sm:$0xff] }
 0x132   :  { %v736_v16 = vld [vmem:[#allocation5 + $0x3b0] sm:$0xff] }
 0x133   :  { %2196 = vmatmul.mubr.f32.vlgmr.msra.gmra.mrb[0].mxu1 %v151_v20  ;;  %2231 = vmatmul.mubr.f32.vlgmr.msra.gmra.mrb[2].mxu0 %v151_v20 }
 0x134   :  { %2832 = vmatpush3.bf16.msra.mxu1 %v2831_v19  ;;  %2265 = vmatprep.mubr.msk.f32.mxu1 %vm3331_vm0, %v3332_v1  ;;  %v546_v19 = vld [vmem:[#allocation5 + $0x2b8] sm:$0xff] }
 0x135   :  { %2833 = vmatprep.subr.bf16.mxu1 %v3330_v0  ;;  %2300 = vmatprep.mubr.msk.f32.mxu0 %vm3331_vm0, %v3332_v1  ;;  %v2888_v20 = vpack.c.bf16 %v546_v19, %v545_v18  ;;  %v738_v19 = vld [vmem:[#allocation5 + $0x3c0] sm:$0xff] }
 0x136   :  { %2856 = vmatpush3.bf16.msra.mxu0 %v2855_v45  ;;  %v640_v45 = vld [vmem:[#allocation5 + $0x328] sm:$0xff] }
 0x137   :  { %2857 = vmatprep.subr.bf16.mxu0 %v3330_v0  ;;  %v2909_v46 = vpack.c.bf16 %v640_v45, %v639_v44  ;;  %v821_v45 = vld [vmem:[#allocation5 + $0x420] sm:$0xff] }
 0x138   :  { %2835 = vmatpush3.bf16.msra.mxu1 %v2834_v23  ;;  %v2891_v23 = vpack.c.bf16 %v548_v22, %v547_v21  ;;  %v740_v22 = vld [vmem:[#allocation5 + $0x3d0] sm:$0xff] }
 0x139   :  { %2836 = vmatprep.subr.bf16.mxu1 %v3330_v0 }
 0x13a   :  { %2859 = vmatpush3.bf16.msra.mxu0 %v2858_v47  ;;  %v641_v47 = vld [vmem:[#allocation5 + $0x330] sm:$0xff] }
 0x13b   :  { %2860 = vmatprep.subr.bf16.mxu0 %v3330_v0  ;;  %v2912_v49 = vpack.c.bf16 %v642_v48, %v641_v47  ;;  %v823_v48 = vld [vmem:[#allocation5 + $0x430] sm:$0xff] }
 0x13c   :  { %2838 = vmatpush3.bf16.msra.mxu1 %v2837_v26  ;;  %v2894_v26 = vpack.c.bf16 %v550_v25, %v549_v24  ;;  %v742_v25 = vld [vmem:[#allocation5 + $0x3e0] sm:$0xff] }
 0x13d   :  { %2839 = vmatprep.subr.bf16.mxu1 %v3330_v0 }
 0x13e   :  { %2862 = vmatpush3.bf16.msra.mxu0 %v2861_v50  ;;  %v643_v50 = vld [vmem:[#allocation5 + $0x340] sm:$0xff] }
 0x13f   :  { %2863 = vmatprep.subr.bf16.mxu0 %v3330_v0  ;;  %v2915_v52 = vpack.c.bf16 %v644_v51, %v643_v50  ;;  %v825_v51 = vld [vmem:[#allocation5 + $0x440] sm:$0xff] }
 0x140   :  { %2841 = vmatpush3.bf16.msra.mxu1 %v2840_v29 }
 0x141   :  { %2842 = vmatprep.subr.bf16.mxu1 %v3330_v0 }
 0x142   :  { %2865 = vmatpush3.bf16.msra.mxu0 %v2864_v53  ;;  %v645_v53 = vld [vmem:[#allocation5 + $0x350] sm:$0xff] }
 0x143   :  { %2866 = vmatprep.subr.bf16.mxu0 %v3330_v0  ;;  %v2918_v55 = vpack.c.bf16 %v646_v54, %v645_v53  ;;  %v827_v54 = vld [vmem:[#allocation5 + $0x450] sm:$0xff] }
 0x144   :  { %2844 = vmatpush3.bf16.msra.mxu1 %v2843_v32  ;;  %v551_v32 = vld [vmem:[#allocation5 + $0x2e0] sm:$0xff] }
 0x145   :  { %2845 = vmatprep.subr.bf16.mxu1 %v3330_v0  ;;  %v2897_v34 = vpack.c.bf16 %v552_v33, %v551_v32  ;;  %v650_v32 = vld [vmem:[#allocation5 + $0x378] sm:$0xff] }
 0x146   :  { %2868 = vmatpush3.bf16.msra.mxu0 %v2867_v56  ;;  %v647_v56 = vld [vmem:[#allocation5 + $0x360] sm:$0xff] }
 0x147   :  { %2869 = vmatprep.subr.bf16.mxu0 %v3330_v0  ;;  %v2921_v58 = vpack.c.bf16 %v648_v57, %v647_v56  ;;  %v829_v57 = vld [vmem:[#allocation5 + $0x460] sm:$0xff] }
 0x148   :  { %2847 = vmatpush3.bf16.msra.mxu1 %v2846_v35  ;;  %v553_v35 = vld [vmem:[#allocation5 + $0x2f0] sm:$0xff] }
 0x149   :  { %2848 = vmatprep.subr.bf16.mxu1 %v3330_v0  ;;  %v2900_v37 = vpack.c.bf16 %v554_v36, %v553_v35  ;;  %v817_v35 = vld [vmem:[#allocation5 + $0x400] sm:$0xff]  ;;  %v818_v36 = vld [vmem:[#allocation5 + $0x408] sm:$0xff] }
 0x14a   :  { %2871 = vmatpush3.bf16.msra.mxu0 %v2870_v59  ;;  %v1808_v59 = vld [vmem:[#allocation7 + $0x2] ss:$0 sm:$0xff]  ;;  %v2951_v40 = vpack.c.bf16 %v818_v36, %v817_v35  ;;  %v1027_v36 = vld [vmem:[#allocation5 + $0x530] sm:$0xff] }
 0x14b   :  { %2872 = vmatprep.subr.bf16.mxu0 %v3330_v0 }
 0x14c   :  { %2850 = vmatpush3.bf16.msra.mxu1 %v2849_v38  ;;  %v635_v38 = vld [vmem:[#allocation5 + $0x300] sm:$0xff] }
 0x14d   :  { %2851 = vmatprep.subr.bf16.mxu1 %v3330_v0 }
 0x14e   :  { %2874 = vmatpush3.bf16.msra.mxu0 %v2873_v62 }
 0x14f   :  { %2875 = vmatprep.subr.bf16.mxu0 %v3330_v0 }
 0x150   :  { %2853 = vmatpush3.bf16.msra.mxu1 %v2852_v41  ;;  %v2903_v41 = vpack.c.bf16 %v636_v39, %v635_v38 }
 0x151   :  { %2878 = vmatprep.subr.bf16.mxu1 %v3330_v0 }
 0x152   :  { %2877 = vmatpush3.bf16.msra.mxu0 %v2876_v8 }
 0x153   :  { %2902 = vmatprep.subr.bf16.mxu0 %v3330_v0 }
 0x206   :  { %v235_v63 = vpop.f32.mrb[0].mxu1  ;;  %v322_v2 = vpop.f32.mrb[2].mxu0 }
 0x207   :  { %v3447_v3 = vmax.f32 %v235_v63, %v322_v2  ;;  %v2197_v4 = vpop.f32.mrb[1].mxu1  ;;  %v2232_v5 = vpop.f32.mrb[3].mxu0  ;;  %v1809_v63 = vld [vmem:[#allocation7 + $0x3] ss:$0 sm:$0xff] }
 0x208   :  { %v1810_v4 = vld [vmem:[#allocation7 + $0x4] ss:$0 sm:$0xff] }
 0x209   :  { %2266 = vmatmul.mubr.f32.vlgmr.msra.gmra.mrb[2].mxu1 %v3447_v3 }
 0x20a   :  { %2335 = vmatprep.mubr.msk.f32.mxu1 %vm3331_vm0, %v3332_v1  ;;  %2880 = vmatpush3.bf16.msra.mxu1 %v2879_v12  ;;  %v733_v12 = vld [vmem:[#allocation5 + $0x398] sm:$0xff] }
 0x20b   :  { %2881 = vmatprep.subr.bf16.mxu1 %v3330_v0  ;;  %v2930_v13 = vpack.c.bf16 %v733_v12, %v732_v11  ;;  %v929_v11 = vld [vmem:[#allocation5 + $0x4a0] sm:$0xff]  ;;  %v930_v12 = vld [vmem:[#allocation5 + $0x4a8] sm:$0xff] }
 0x20e   :  { %2883 = vmatpush3.bf16.msra.mxu1 %v2882_v14  ;;  %v735_v14 = vld [vmem:[#allocation5 + $0x3a8] sm:$0xff] }
 0x20f   :  { %2884 = vmatprep.subr.bf16.mxu1 %v3330_v0 }
 0x212   :  { %2886 = vmatpush3.bf16.msra.mxu1 %v2885_v17  ;;  %v737_v17 = vld [vmem:[#allocation5 + $0x3b8] sm:$0xff] }
 0x213   :  { %2887 = vmatprep.subr.bf16.mxu1 %v3330_v0  ;;  %v2936_v18 = vpack.c.bf16 %v737_v17, %v736_v16  ;;  %v934_v16 = vld [vmem:[#allocation5 + $0x4c8] sm:$0xff] }
 0x216   :  { %2889 = vmatpush3.bf16.msra.mxu1 %v2888_v20  ;;  %v739_v20 = vld [vmem:[#allocation5 + $0x3c8] sm:$0xff] }
 0x217   :  { %2890 = vmatprep.subr.bf16.mxu1 %v3330_v0  ;;  %v2939_v21 = vpack.c.bf16 %v739_v20, %v738_v19  ;;  %v936_v19 = vld [vmem:[#allocation5 + $0x4d8] sm:$0xff] }
 0x21a   :  { %2892 = vmatpush3.bf16.msra.mxu1 %v2891_v23  ;;  %v741_v23 = vld [vmem:[#allocation5 + $0x3d8] sm:$0xff] }
 0x21b   :  { %2893 = vmatprep.subr.bf16.mxu1 %v3330_v0  ;;  %v2942_v24 = vpack.c.bf16 %v741_v23, %v740_v22  ;;  %v938_v22 = vld [vmem:[#allocation5 + $0x4e8] sm:$0xff] }
 0x21e   :  { %2895 = vmatpush3.bf16.msra.mxu1 %v2894_v26  ;;  %v743_v26 = vld [vmem:[#allocation5 + $0x3e8] sm:$0xff] }
 0x21f   :  { %2896 = vmatprep.subr.bf16.mxu1 %v3330_v0 }
 0x222   :  { %2898 = vmatpush3.bf16.msra.mxu1 %v2897_v34  ;;  %v1811_v34 = vld [vmem:[#allocation7 + $0x5] ss:$0 sm:$0xff] }
 0x223   :  { %2899 = vmatprep.subr.bf16.mxu1 %v3330_v0 }
 0x226   :  { %2901 = vmatpush3.bf16.msra.mxu1 %v2900_v37 }
 0x227   :  { %2926 = vmatprep.subr.bf16.mxu1 %v3330_v0 }
 0x2dc   :  { %v418_v28 = vpop.f32.mrb[2].mxu1 }
 0x2dd   :  { %v419_v29 = vadd.f32 %v1807_v27, %v418_v28  ;;  %v2267_v30 = vpop.f32.mrb[3].mxu1  ;;  %v2945_v27 = vpack.c.bf16 %v743_v26, %v742_v25  ;;  %v744_v28 = vld [vmem:[#allocation5 + $0x3f0] sm:$0xff]  ;;  %v940_v25 = vld [vmem:[#allocation5 + $0x4f8] sm:$0xff] }
 0x2df   :  { %v422_v31 = vmax.f32 %v419_v29, 0.0  ;;  %v745_v29 = vld [vmem:[#allocation5 + $0x3f8] sm:$0xff] }
 0x2e0   :  { %v2948_v30 = vpack.c.bf16 %v745_v29, %v744_v28  ;;  %v1022_v28 = vld [vmem:[#allocation5 + $0x508] sm:$0xff]  ;;  %v1023_v29 = vld [vmem:[#allocation5 + $0x510] sm:$0xff] }
 0x2e1   :  { %2301 = vmatmul.mubr.f32.vlgmr.msra.gmra.mrb[4].mxu0 %v422_v31  ;;  %v649_v31 = vld [vmem:[#allocation5 + $0x370] sm:$0xff] }
 0x2e2   :  { %2370 = vmatprep.mubr.msk.f32.mxu0 %vm3331_vm0, %v3332_v1  ;;  %2904 = vmatpush3.bf16.msra.mxu0 %v2903_v41  ;;  %v2924_v33 = vpack.c.bf16 %v650_v32, %v649_v31  ;;  %v1024_v31 = vld [vmem:[#allocation5 + $0x518] sm:$0xff] }
 0x2e3   :  { %2905 = vmatprep.subr.bf16.mxu0 %v3330_v0  ;;  %v3002_v32 = vpack.c.bf16 %v1024_v31, %v1023_v29  ;;  %v1119_v29 = vld [vmem:[#allocation5 + $0x598] sm:$0xff]  ;;  %v1120_v31 = vld [vmem:[#allocation5 + $0x5a0] sm:$0xff] }
 0x2e6   :  { %2907 = vmatpush3.bf16.msra.mxu0 %v2906_v43  ;;  %v820_v43 = vld [vmem:[#allocation5 + $0x418] sm:$0xff] }
 0x2e7   :  { %2908 = vmatprep.subr.bf16.mxu0 %v3330_v0  ;;  %v2954_v44 = vpack.c.bf16 %v820_v43, %v819_v42  ;;  %v1031_v42 = vld [vmem:[#allocation5 + $0x550] sm:$0xff]  ;;  %v1032_v43 = vld [vmem:[#allocation5 + $0x558] sm:$0xff] }
 0x2ea   :  { %2910 = vmatpush3.bf16.msra.mxu0 %v2909_v46  ;;  %v822_v46 = vld [vmem:[#allocation5 + $0x428] sm:$0xff] }
 0x2eb   :  { %2911 = vmatprep.subr.bf16.mxu0 %v3330_v0  ;;  %v2957_v47 = vpack.c.bf16 %v822_v46, %v821_v45  ;;  %v1033_v45 = vld [vmem:[#allocation5 + $0x560] sm:$0xff]  ;;  %v1034_v46 = vld [vmem:[#allocation5 + $0x568] sm:$0xff] }
 0x2ee   :  { %2913 = vmatpush3.bf16.msra.mxu0 %v2912_v49  ;;  %v824_v49 = vld [vmem:[#allocation5 + $0x438] sm:$0xff] }
 0x2ef   :  { %2914 = vmatprep.subr.bf16.mxu0 %v3330_v0  ;;  %v2960_v50 = vpack.c.bf16 %v824_v49, %v823_v48 }
 0x2f2   :  { %2916 = vmatpush3.bf16.msra.mxu0 %v2915_v52  ;;  %v826_v52 = vld [vmem:[#allocation5 + $0x448] sm:$0xff] }
 0x2f3   :  { %2917 = vmatprep.subr.bf16.mxu0 %v3330_v0  ;;  %v2963_v53 = vpack.c.bf16 %v826_v52, %v825_v51 }
 0x2f6   :  { %2919 = vmatpush3.bf16.msra.mxu0 %v2918_v55  ;;  %v828_v55 = vld [vmem:[#allocation5 + $0x458] sm:$0xff] }
 0x2f7   :  { %2920 = vmatprep.subr.bf16.mxu0 %v3330_v0  ;;  %v2966_v56 = vpack.c.bf16 %v828_v55, %v827_v54  ;;  %v1813_v55 = vld [vmem:[#allocation7 + $0x7] ss:$0 sm:$0xff] }
 0x2fa   :  { %2922 = vmatpush3.bf16.msra.mxu0 %v2921_v58  ;;  %v830_v58 = vld [vmem:[#allocation5 + $0x468] sm:$0xff] }
 0x2fb   :  { %2923 = vmatprep.subr.bf16.mxu0 %v3330_v0 }
 0x2fe   :  { %2925 = vmatpush3.bf16.msra.mxu0 %v2924_v33  ;;  %v1025_v33 = vld [vmem:[#allocation5 + $0x520] sm:$0xff] }
 0x2ff   :  { %2950 = vmatprep.subr.bf16.mxu0 %v3330_v0 }
 0x3b4   :  { %v514_v60 = vpop.f32.mrb[4].mxu0 }
 0x3b5   :  { %v515_v61 = vadd.f32 %v1808_v59, %v514_v60  ;;  %v2302_v62 = vpop.f32.mrb[5].mxu0  ;;  %v2969_v59 = vpack.c.bf16 %v830_v58, %v829_v57  ;;  %v831_v60 = vld [vmem:[#allocation5 + $0x470] sm:$0xff]  ;;  %v1814_v57 = vld [vmem:[#allocation7 + $0x8] ss:$0 sm:$0xff] }
 0x3b7   :  { %v3471_v2 = vadd.f32 %v515_v61, %v3447_v3  ;;  %v734_v3 = vld [vmem:[#allocation5 + $0x3a0] sm:$0xff]  ;;  %v832_v61 = vld [vmem:[#allocation5 + $0x478] sm:$0xff] }
 0x3b8   :  { %v2933_v15 = vpack.c.bf16 %v735_v14, %v734_v3  ;;  %v2972_v62 = vpack.c.bf16 %v832_v61, %v831_v60  ;;  %v931_v3 = vld [vmem:[#allocation5 + $0x4b0] sm:$0xff] }
 0x3b9   :  { %v527_v5 = vmul.f32 %v1809_v63, %v3471_v2  ;;  %v1035_v61 = vld [vmem:[#allocation5 + $0x570] sm:$0xff] }
 0x3bb   :  { %v536_v8 = vadd.f32 %v1810_v4, %v527_v5  ;;  %v925_v5 = vld [vmem:[#allocation5 + $0x480] sm:$0xff] }
 0x3bd   :  { %v537_v10 = vmax.f32 %v536_v8, 0.0  ;;  %v2975_v8 = vpack.c.bf16 %v926_v6, %v925_v5  ;;  %v1224_v5 = vld [vmem:[#allocation5 + $0x608] sm:$0xff] }
 0x3bf   :  { %2336 = vmatmul.mubr.f32.vlgmr.msra.gmra.mrb[4].mxu1 %v537_v10 }
 0x3c0   :  { %2928 = vmatpush3.bf16.msra.mxu1 %v2927_v9  ;;  %2405 = vmatprep.mubr.msk.f32.mxu1 %vm3331_vm0, %v3332_v1  ;;  %v928_v9 = vld [vmem:[#allocation5 + $0x498] sm:$0xff] }
 0x3c1   :  { %2929 = vmatprep.subr.bf16.mxu1 %v3330_v0  ;;  %v2978_v10 = vpack.c.bf16 %v928_v9, %v927_v7  ;;  %v1225_v7 = vld [vmem:[#allocation5 + $0x610] sm:$0xff] }
 0x3c4   :  { %2931 = vmatpush3.bf16.msra.mxu1 %v2930_v13  ;;  %v2981_v13 = vpack.c.bf16 %v930_v12, %v929_v11  ;;  %v1228_v11 = vld [vmem:[#allocation5 + $0x628] sm:$0xff] }
 0x3c5   :  { %2932 = vmatprep.subr.bf16.mxu1 %v3330_v0 }
 0x3c8   :  { %2934 = vmatpush3.bf16.msra.mxu1 %v2933_v15  ;;  %v933_v15 = vld [vmem:[#allocation5 + $0x4c0] sm:$0xff] }
 0x3c9   :  { %2935 = vmatprep.subr.bf16.mxu1 %v3330_v0  ;;  %v2987_v17 = vpack.c.bf16 %v934_v16, %v933_v15  ;;  %v1232_v15 = vld [vmem:[#allocation5 + $0x648] sm:$0xff] }
 0x3cc   :  { %2937 = vmatpush3.bf16.msra.mxu1 %v2936_v18  ;;  %v935_v18 = vld [vmem:[#allocation5 + $0x4d0] sm:$0xff] }
 0x3cd   :  { %2938 = vmatprep.subr.bf16.mxu1 %v3330_v0  ;;  %v2990_v20 = vpack.c.bf16 %v936_v19, %v935_v18  ;;  %v1234_v18 = vld [vmem:[#allocation5 + $0x658] sm:$0xff] }
 0x3d0   :  { %2940 = vmatpush3.bf16.msra.mxu1 %v2939_v21  ;;  %v937_v21 = vld [vmem:[#allocation5 + $0x4e0] sm:$0xff] }
 0x3d1   :  { %2941 = vmatprep.subr.bf16.mxu1 %v3330_v0  ;;  %v2993_v23 = vpack.c.bf16 %v938_v22, %v937_v21  ;;  %v1116_v21 = vld [vmem:[#allocation5 + $0x580] sm:$0xff]  ;;  %v1117_v22 = vld [vmem:[#allocation5 + $0x588] sm:$0xff] }
 0x3d4   :  { %2943 = vmatpush3.bf16.msra.mxu1 %v2942_v24  ;;  %v939_v24 = vld [vmem:[#allocation5 + $0x4f0] sm:$0xff] }
 0x3d5   :  { %2944 = vmatprep.subr.bf16.mxu1 %v3330_v0  ;;  %v2996_v26 = vpack.c.bf16 %v940_v25, %v939_v24 }
 0x3d8   :  { %2946 = vmatpush3.bf16.msra.mxu1 %v2945_v27  ;;  %v1021_v27 = vld [vmem:[#allocation5 + $0x500] sm:$0xff] }
 0x3d9   :  { %2947 = vmatprep.subr.bf16.mxu1 %v3330_v0 }
 0x3dc   :  { %2949 = vmatpush3.bf16.msra.mxu1 %v2948_v30  ;;  %v2999_v30 = vpack.c.bf16 %v1022_v28, %v1021_v27  ;;  %v1118_v28 = vld [vmem:[#allocation5 + $0x590] sm:$0xff] }
 0x3dd   :  { %2974 = vmatprep.subr.bf16.mxu1 %v3330_v0 }
 0x3df   :  { %2406 = vmatmul.mubr.f32.vlgmr.msra.gmra.mrb[6].mxu1 %v3471_v2 }
 0x3e0   :  { %2475 = vmatprep.mubr.msk.f32.mxu1 %vm3331_vm0, %v3332_v1  ;;  %2976 = vmatpush3.bf16.msra.mxu1 %v2975_v8  ;;  %v1226_v8 = vld [vmem:[#allocation5 + $0x618] sm:$0xff] }
 0x3e1   :  { %2977 = vmatprep.subr.bf16.mxu1 %v3330_v0  ;;  %v3050_v9 = vpack.c.bf16 %v1226_v8, %v1225_v7  ;;  %v1426_v7 = vld [vmem:[#allocation5 + $0x760] sm:$0xff]  ;;  %v1427_v8 = vld [vmem:[#allocation5 + $0x768] sm:$0xff] }
 0x3e4   :  { %2979 = vmatpush3.bf16.msra.mxu1 %v2978_v10  ;;  %v1227_v10 = vld [vmem:[#allocation5 + $0x620] sm:$0xff] }
 0x3e5   :  { %2980 = vmatprep.subr.bf16.mxu1 %v3330_v0  ;;  %v3053_v12 = vpack.c.bf16 %v1228_v11, %v1227_v10  ;;  %v1428_v10 = vld [vmem:[#allocation5 + $0x770] sm:$0xff]  ;;  %v1429_v11 = vld [vmem:[#allocation5 + $0x778] sm:$0xff] }
 0x3e8   :  { %2982 = vmatpush3.bf16.msra.mxu1 %v2981_v13  ;;  %v1229_v13 = vld [vmem:[#allocation5 + $0x630] sm:$0xff] }
 0x3e9   :  { %2983 = vmatprep.subr.bf16.mxu1 %v3330_v0 }
 0x492   :  { %v629_v37 = vpop.f32.mrb[4].mxu1 }
 0x493   :  { %v630_v38 = vadd.f32 %v1811_v34, %v629_v37  ;;  %v2337_v39 = vpop.f32.mrb[5].mxu1  ;;  %v1026_v34 = vld [vmem:[#allocation5 + $0x528] sm:$0xff]  ;;  %v1028_v37 = vld [vmem:[#allocation5 + $0x538] sm:$0xff] }
 0x494   :  { %v3005_v35 = vpack.c.bf16 %v1026_v34, %v1025_v33  ;;  %v1029_v39 = vld [vmem:[#allocation5 + $0x540] sm:$0xff]  ;;  %v1122_v34 = vld [vmem:[#allocation5 + $0x5b0] sm:$0xff] }
 0x495   :  { %v633_v41 = vmax.f32 %v630_v38, 0.0  ;;  %v3008_v38 = vpack.c.bf16 %v1028_v37, %v1027_v36  ;;  %v1124_v37 = vld [vmem:[#allocation5 + $0x5c0] sm:$0xff] }
 0x497   :  { %2371 = vmatmul.mubr.f32.vlgmr.msra.gmra.mrb[6].mxu0 %v633_v41 }
 0x498   :  { %2952 = vmatpush3.bf16.msra.mxu0 %v2951_v40  ;;  %2440 = vmatprep.mubr.msk.f32.mxu0 %vm3331_vm0, %v3332_v1  ;;  %v1030_v40 = vld [vmem:[#allocation5 + $0x548] sm:$0xff] }
 0x499   :  { %2953 = vmatprep.subr.bf16.mxu0 %v3330_v0  ;;  %v3011_v41 = vpack.c.bf16 %v1030_v40, %v1029_v39  ;;  %v1126_v40 = vld [vmem:[#allocation5 + $0x5d0] sm:$0xff] }
 0x49c   :  { %2955 = vmatpush3.bf16.msra.mxu0 %v2954_v44  ;;  %v3014_v44 = vpack.c.bf16 %v1032_v43, %v1031_v42  ;;  %v1128_v43 = vld [vmem:[#allocation5 + $0x5e0] sm:$0xff] }
 0x49d   :  { %2956 = vmatprep.subr.bf16.mxu0 %v3330_v0 }
 0x4a0   :  { %2958 = vmatpush3.bf16.msra.mxu0 %v2957_v47  ;;  %v3017_v47 = vpack.c.bf16 %v1034_v46, %v1033_v45  ;;  %v1130_v46 = vld [vmem:[#allocation5 + $0x5f0] sm:$0xff] }
 0x4a1   :  { %2959 = vmatprep.subr.bf16.mxu0 %v3330_v0 }
 0x4a4   :  { %2961 = vmatpush3.bf16.msra.mxu0 %v2960_v50  ;;  %v1812_v50 = vld [vmem:[#allocation7 + $0x6] ss:$0 sm:$0xff] }
 0x4a5   :  { %2962 = vmatprep.subr.bf16.mxu0 %v3330_v0 }
 0x4a8   :  { %2964 = vmatpush3.bf16.msra.mxu0 %v2963_v53 }
 0x4a9   :  { %2965 = vmatprep.subr.bf16.mxu0 %v3330_v0 }
 0x4ac   :  { %2967 = vmatpush3.bf16.msra.mxu0 %v2966_v56 }
 0x4ad   :  { %2968 = vmatprep.subr.bf16.mxu0 %v3330_v0 }
 0x4b0   :  { %2970 = vmatpush3.bf16.msra.mxu0 %v2969_v59 }
 0x4b1   :  { %2971 = vmatprep.subr.bf16.mxu0 %v3330_v0 }
 0x4b2   :  { %v3497_v63 = vpop.f32.mrb[6].mxu1 }
 0x4b3   :  { %v2407_v4 = vpop.f32.mrb[7].mxu1 }
 0x4b4   :  { %2973 = vmatpush3.bf16.msra.mxu0 %v2972_v62  ;;  %v1036_v62 = vld [vmem:[#allocation5 + $0x578] sm:$0xff] }
 0x4b5   :  { %2998 = vmatprep.subr.bf16.mxu0 %v3330_v0  ;;  %v3020_v4 = vpack.c.bf16 %v1036_v62, %v1035_v61  ;;  %v1423_v62 = vld [vmem:[#allocation5 + $0x748] sm:$0xff] }
 0x4b7   :  { %2441 = vmatmul.mubr.f32.vlgmr.msra.gmra.mrb[8].mxu0 %v3471_v2  ;;  %v932_v2 = vld [vmem:[#allocation5 + $0x4b8] sm:$0xff] }
 0x4b8   :  { %2510 = vmatprep.mubr.msk.f32.mxu0 %vm3331_vm0, %v3332_v1  ;;  %v2984_v14 = vpack.c.bf16 %v932_v2, %v931_v3  ;;  %3000 = vmatpush3.bf16.msra.mxu0 %v2999_v30  ;;  %v1230_v3 = vld [vmem:[#allocation5 + $0x638] sm:$0xff]  ;;  %v3026_v30 = vpack.c.bf16 %v1119_v29, %v1118_v28  ;;  %v1321_v29 = vld [vmem:[#allocation5 + $0x690] sm:$0xff] }
 0x4b9   :  { %3001 = vmatprep.subr.bf16.mxu0 %v3330_v0  ;;  %v3056_v2 = vpack.c.bf16 %v1230_v3, %v1229_v13  ;;  %v1235_v13 = vld [vmem:[#allocation5 + $0x660] sm:$0xff]  ;;  %v1236_v3 = vld [vmem:[#allocation5 + $0x668] sm:$0xff] }
 0x4ba   :  { %2985 = vmatpush3.bf16.msra.mxu1 %v2984_v14  ;;  %v1231_v14 = vld [vmem:[#allocation5 + $0x640] sm:$0xff] }
 0x4bb   :  { %2986 = vmatprep.subr.bf16.mxu1 %v3330_v0  ;;  %v3059_v16 = vpack.c.bf16 %v1232_v15, %v1231_v14  ;;  %v1237_v14 = vld [vmem:[#allocation5 + $0x670] sm:$0xff]  ;;  %v1238_v15 = vld [vmem:[#allocation5 + $0x678] sm:$0xff] }
 0x4bc   :  { %3003 = vmatpush3.bf16.msra.mxu0 %v3002_v32  ;;  %v1121_v32 = vld [vmem:[#allocation5 + $0x5a8] sm:$0xff] }
 0x4bd   :  { %3004 = vmatprep.subr.bf16.mxu0 %v3330_v0  ;;  %v3029_v33 = vpack.c.bf16 %v1121_v32, %v1120_v31  ;;  %v1323_v32 = vld [vmem:[#allocation5 + $0x6a0] sm:$0xff] }
 0x4be   :  { %2988 = vmatpush3.bf16.msra.mxu1 %v2987_v17  ;;  %v1233_v17 = vld [vmem:[#allocation5 + $0x650] sm:$0xff] }
 0x4bf   :  { %2989 = vmatprep.subr.bf16.mxu1 %v3330_v0  ;;  %v3062_v19 = vpack.c.bf16 %v1234_v18, %v1233_v17  ;;  %v1816_v17 = vld [vmem:[#allocation7 + $0xa] ss:$0 sm:$0xff] }
 0x4c0   :  { %3006 = vmatpush3.bf16.msra.mxu0 %v3005_v35  ;;  %v1123_v35 = vld [vmem:[#allocation5 + $0x5b8] sm:$0xff] }
 0x4c1   :  { %3007 = vmatprep.subr.bf16.mxu0 %v3330_v0  ;;  %v3032_v36 = vpack.c.bf16 %v1123_v35, %v1122_v34  ;;  %v1325_v35 = vld [vmem:[#allocation5 + $0x6b0] sm:$0xff] }
 0x4c2   :  { %2991 = vmatpush3.bf16.msra.mxu1 %v2990_v20  ;;  %v1815_v20 = vld [vmem:[#allocation7 + $0x9] ss:$0 sm:$0xff] }
 0x4c3   :  { %2992 = vmatprep.subr.bf16.mxu1 %v3330_v0 }
 0x4c4   :  { %3009 = vmatpush3.bf16.msra.mxu0 %v3008_v38  ;;  %v1125_v38 = vld [vmem:[#allocation5 + $0x5c8] sm:$0xff] }
 0x4c5   :  { %3010 = vmatprep.subr.bf16.mxu0 %v3330_v0  ;;  %v3035_v39 = vpack.c.bf16 %v1125_v38, %v1124_v37  ;;  %v1327_v38 = vld [vmem:[#allocation5 + $0x6c0] sm:$0xff] }
 0x4c6   :  { %2994 = vmatpush3.bf16.msra.mxu1 %v2993_v23 }
 0x4c7   :  { %2995 = vmatprep.subr.bf16.mxu1 %v3330_v0 }
 0x4c8   :  { %3012 = vmatpush3.bf16.msra.mxu0 %v3011_v41  ;;  %v1127_v41 = vld [vmem:[#allocation5 + $0x5d8] sm:$0xff] }
 0x4c9   :  { %3013 = vmatprep.subr.bf16.mxu0 %v3330_v0  ;;  %v3038_v42 = vpack.c.bf16 %v1127_v41, %v1126_v40  ;;  %v1329_v41 = vld [vmem:[#allocation5 + $0x6d0] sm:$0xff] }
 0x4ca   :  { %2997 = vmatpush3.bf16.msra.mxu1 %v2996_v26  ;;  %v3023_v26 = vpack.c.bf16 %v1117_v22, %v1116_v21  ;;  %v1818_v22 = vld [vmem:[#allocation7 + $0xc] ss:$0 sm:$0xff] }
 0x4cb   :  { %3046 = vmatprep.subr.bf16.mxu1 %v3330_v0 }
 0x4cc   :  { %3015 = vmatpush3.bf16.msra.mxu0 %v3014_v44  ;;  %v1129_v44 = vld [vmem:[#allocation5 + $0x5e8] sm:$0xff] }
 0x4cd   :  { %3016 = vmatprep.subr.bf16.mxu0 %v3330_v0  ;;  %v3041_v45 = vpack.c.bf16 %v1129_v44, %v1128_v43  ;;  %v1331_v44 = vld [vmem:[#allocation5 + $0x6e0] sm:$0xff] }
 0x4d0   :  { %3018 = vmatpush3.bf16.msra.mxu0 %v3017_v47  ;;  %v1131_v47 = vld [vmem:[#allocation5 + $0x5f8] sm:$0xff] }
 0x4d1   :  { %3019 = vmatprep.subr.bf16.mxu0 %v3330_v0 }
 0x4d4   :  { %3021 = vmatpush3.bf16.msra.mxu0 %v3020_v4 }
 0x4d5   :  { %3022 = vmatprep.subr.bf16.mxu0 %v3330_v0 }
 0x56a   :  { %v725_v48 = vpop.f32.mrb[6].mxu0 }
 0x56b   :  { %v2372_v49 = vpop.f32.mrb[7].mxu0  ;;  %v726_v52 = vadd.f32 %v1812_v50, %v725_v48  ;;  %v3044_v48 = vpack.c.bf16 %v1131_v47, %v1130_v46  ;;  %v1415_v50 = vld [vmem:[#allocation5 + $0x708] sm:$0xff]  ;;  %v1333_v47 = vld [vmem:[#allocation5 + $0x6f0] sm:$0xff] }
 0x56c   :  { %v1414_v49 = vld [vmem:[#allocation5 + $0x700] sm:$0xff] }
 0x58a   :  { %v899_v51 = vpop.f32.mrb[8].mxu0 }
 0x58b   :  { %v903_v53 = vmax.f32 %v3497_v63, %v899_v51  ;;  %v2442_v54 = vpop.f32.mrb[9].mxu0  ;;  %v1223_v63 = vld [vmem:[#allocation5 + $0x600] sm:$0xff]  ;;  %v3095_v51 = vpack.c.bf16 %v1415_v50, %v1414_v49 }
 0x58c   :  { %v3047_v6 = vpack.c.bf16 %v1224_v5, %v1223_v63  ;;  %v1424_v63 = vld [vmem:[#allocation5 + $0x750] sm:$0xff]  ;;  %v1425_v5 = vld [vmem:[#allocation5 + $0x758] sm:$0xff] }
 0x58d   :  { %v3519_v56 = vadd.f32 %v903_v53, %v726_v52  ;;  %v1416_v52 = vld [vmem:[#allocation5 + $0x710] sm:$0xff]  ;;  %v1417_v53 = vld [vmem:[#allocation5 + $0x718] sm:$0xff] }
 0x58e   :  { %v3098_v54 = vpack.c.bf16 %v1417_v53, %v1416_v52  ;;  %v1819_v52 = vld [vmem:[#allocation7 + $0xd] ss:$0 sm:$0xff]  ;;  %v1501_v53 = vld [vmem:[#allocation5 + $0x780] sm:$0xff] }
 0x58f   :  { %v913_v58 = vmul.f32 %v1813_v55, %v3519_v56  ;;  %v1418_v55 = vld [vmem:[#allocation5 + $0x720] sm:$0xff] }
 0x591   :  { %v922_v59 = vadd.f32 %v1814_v57, %v913_v58  ;;  %v1419_v57 = vld [vmem:[#allocation5 + $0x728] sm:$0xff] }
 0x592   :  { %v3101_v58 = vpack.c.bf16 %v1419_v57, %v1418_v55 }
 0x593   :  { %v923_v60 = vmax.f32 %v922_v59, 0.0  ;;  %v1420_v59 = vld [vmem:[#allocation5 + $0x730] sm:$0xff] }
 0x595   :  { %2476 = vmatmul.mubr.f32.vlgmr.msra.gmra.mrb[8].mxu1 %v923_v60  ;;  %v1421_v60 = vld [vmem:[#allocation5 + $0x738] sm:$0xff] }
 0x596   :  { %2580 = vmatprep.mubr.msk.f32.mxu1 %vm3331_vm0, %v3332_v1  ;;  %3048 = vmatpush3.bf16.msra.mxu1 %v3047_v6  ;;  %v3104_v61 = vpack.c.bf16 %v1421_v60, %v1420_v59  ;;  %v3110_v6 = vpack.c.bf16 %v1425_v5, %v1424_v63  ;;  %v1506_v63 = vld [vmem:[#allocation5 + $0x7a8] sm:$0xff] }
 0x597   :  { %3049 = vmatprep.subr.bf16.mxu1 %v3330_v0 }
 0x59a   :  { %3051 = vmatpush3.bf16.msra.mxu1 %v3050_v9  ;;  %v3113_v9 = vpack.c.bf16 %v1427_v8, %v1426_v7  ;;  %v1508_v7 = vld [vmem:[#allocation5 + $0x7b8] sm:$0xff] }
 0x59b   :  { %3052 = vmatprep.subr.bf16.mxu1 %v3330_v0 }
 0x59e   :  { %3054 = vmatpush3.bf16.msra.mxu1 %v3053_v12  ;;  %v3116_v12 = vpack.c.bf16 %v1429_v11, %v1428_v10  ;;  %v1510_v10 = vld [vmem:[#allocation5 + $0x7c8] sm:$0xff] }
 0x59f   :  { %3055 = vmatprep.subr.bf16.mxu1 %v3330_v0 }
 0x5a2   :  { %3057 = vmatpush3.bf16.msra.mxu1 %v3056_v2  ;;  %v3065_v2 = vpack.c.bf16 %v1236_v3, %v1235_v13  ;;  %v1512_v13 = vld [vmem:[#allocation5 + $0x7d8] sm:$0xff] }
 0x5a3   :  { %3058 = vmatprep.subr.bf16.mxu1 %v3330_v0 }
 0x5a6   :  { %3060 = vmatpush3.bf16.msra.mxu1 %v3059_v16  ;;  %v3068_v16 = vpack.c.bf16 %v1238_v15, %v1237_v14  ;;  %v1514_v14 = vld [vmem:[#allocation5 + $0x7e8] sm:$0xff] }
 0x5a7   :  { %3061 = vmatprep.subr.bf16.mxu1 %v3330_v0 }
 0x5aa   :  { %3063 = vmatpush3.bf16.msra.mxu1 %v3062_v19  ;;  %v1817_v19 = vld [vmem:[#allocation7 + $0xb] ss:$0 sm:$0xff] }
 0x5ab   :  { %3064 = vmatprep.subr.bf16.mxu1 %v3330_v0 }
 0x5ae   :  { %3066 = vmatpush3.bf16.msra.mxu1 %v3065_v2  ;;  %v1513_v2 = vld [vmem:[#allocation5 + $0x7e0] sm:$0xff] }
 0x5af   :  { %3067 = vmatprep.subr.bf16.mxu1 %v3330_v0  ;;  %v3137_v15 = vpack.c.bf16 %v1514_v14, %v1513_v2 }
 0x5b2   :  { %3069 = vmatpush3.bf16.msra.mxu1 %v3068_v16  ;;  %v1515_v16 = vld [vmem:[#allocation5 + $0x7f0] sm:$0xff] }
 0x5b3   :  { %3070 = vmatprep.subr.bf16.mxu1 %v3330_v0 }
 0x668   :  { %v1015_v23 = vpop.f32.mrb[8].mxu1 }
 0x669   :  { %v1016_v24 = vadd.f32 %v1815_v20, %v1015_v23  ;;  %v2477_v25 = vpop.f32.mrb[9].mxu1 }
 0x66a   :  { %v1320_v25 = vld [vmem:[#allocation5 + $0x688] sm:$0xff] }
 0x66b   :  { %v1019_v27 = vmax.f32 %v1016_v24, 0.0  ;;  %v1319_v24 = vld [vmem:[#allocation5 + $0x680] sm:$0xff] }
 0x66d   :  { %2511 = vmatmul.mubr.f32.vlgmr.msra.gmra.mrb[10].mxu0 %v1019_v27  ;;  %v3071_v27 = vpack.c.bf16 %v1320_v25, %v1319_v24  ;;  %v1594_v24 = vld [vmem:[#allocation5 + $0x818] sm:$0xff] }
 0x66e   :  { %3024 = vmatpush3.bf16.msra.mxu0 %v3023_v26  ;;  %2545 = vmatprep.mubr.msk.f32.mxu0 %vm3331_vm0, %v3332_v1 }
 0x66f   :  { %3025 = vmatprep.subr.bf16.mxu0 %v3330_v0 }
 0x672   :  { %3027 = vmatpush3.bf16.msra.mxu0 %v3026_v30  ;;  %v1322_v30 = vld [vmem:[#allocation5 + $0x698] sm:$0xff] }
 0x673   :  { %3028 = vmatprep.subr.bf16.mxu0 %v3330_v0  ;;  %v3074_v31 = vpack.c.bf16 %v1322_v30, %v1321_v29  ;;  %v1597_v29 = vld [vmem:[#allocation5 + $0x830] sm:$0xff] }
 0x676   :  { %3030 = vmatpush3.bf16.msra.mxu0 %v3029_v33  ;;  %v1324_v33 = vld [vmem:[#allocation5 + $0x6a8] sm:$0xff] }
 0x677   :  { %3031 = vmatprep.subr.bf16.mxu0 %v3330_v0  ;;  %v3077_v34 = vpack.c.bf16 %v1324_v33, %v1323_v32  ;;  %v1601_v33 = vld [vmem:[#allocation5 + $0x850] sm:$0xff] }
 0x67a   :  { %3033 = vmatpush3.bf16.msra.mxu0 %v3032_v36  ;;  %v1326_v36 = vld [vmem:[#allocation5 + $0x6b8] sm:$0xff] }
 0x67b   :  { %3034 = vmatprep.subr.bf16.mxu0 %v3330_v0  ;;  %v3080_v37 = vpack.c.bf16 %v1326_v36, %v1325_v35  ;;  %v1603_v36 = vld [vmem:[#allocation5 + $0x860] sm:$0xff] }
 0x67e   :  { %3036 = vmatpush3.bf16.msra.mxu0 %v3035_v39  ;;  %v1328_v39 = vld [vmem:[#allocation5 + $0x6c8] sm:$0xff] }
 0x67f   :  { %3037 = vmatprep.subr.bf16.mxu0 %v3330_v0  ;;  %v3083_v40 = vpack.c.bf16 %v1328_v39, %v1327_v38  ;;  %v1605_v39 = vld [vmem:[#allocation5 + $0x870] sm:$0xff] }
 0x682   :  { %3039 = vmatpush3.bf16.msra.mxu0 %v3038_v42  ;;  %v1330_v42 = vld [vmem:[#allocation5 + $0x6d8] sm:$0xff] }
 0x683   :  { %3040 = vmatprep.subr.bf16.mxu0 %v3330_v0  ;;  %v3086_v43 = vpack.c.bf16 %v1330_v42, %v1329_v41  ;;  %v1680_v42 = vld [vmem:[#allocation5 + $0x880] sm:$0xff] }
 0x686   :  { %3042 = vmatpush3.bf16.msra.mxu0 %v3041_v45  ;;  %v1332_v45 = vld [vmem:[#allocation5 + $0x6e8] sm:$0xff] }
 0x687   :  { %3043 = vmatprep.subr.bf16.mxu0 %v3330_v0  ;;  %v3089_v46 = vpack.c.bf16 %v1332_v45, %v1331_v44  ;;  %v1682_v44 = vld [vmem:[#allocation5 + $0x890] sm:$0xff] }
 0x68a   :  { %3045 = vmatpush3.bf16.msra.mxu0 %v3044_v48  ;;  %v1334_v48 = vld [vmem:[#allocation5 + $0x6f8] sm:$0xff] }
 0x68b   :  { %3094 = vmatprep.subr.bf16.mxu0 %v3330_v0  ;;  %v3092_v49 = vpack.c.bf16 %v1334_v48, %v1333_v47  ;;  %v1684_v48 = vld [vmem:[#allocation5 + $0x8a0] sm:$0xff] }
 0x68d   :  { %2546 = vmatmul.mubr.f32.vlgmr.msra.gmra.mrb[10].mxu0 %v3519_v56  ;;  %v1422_v56 = vld [vmem:[#allocation5 + $0x740] sm:$0xff] }
 0x68e   :  { %3096 = vmatpush3.bf16.msra.mxu0 %v3095_v51  ;;  %2650 = vmatprep.mubr.msk.f32.mxu0 %vm3331_vm0, %v3332_v1  ;;  %v3107_v4 = vpack.c.bf16 %v1423_v62, %v1422_v56  ;;  %v1504_v56 = vld [vmem:[#allocation5 + $0x798] sm:$0xff] }
 0x68f   :  { %3097 = vmatprep.subr.bf16.mxu0 %v3330_v0 }
 0x692   :  { %3099 = vmatpush3.bf16.msra.mxu0 %v3098_v54  ;;  %v1502_v54 = vld [vmem:[#allocation5 + $0x788] sm:$0xff] }
 0x693   :  { %3100 = vmatprep.subr.bf16.mxu0 %v3330_v0  ;;  %v3119_v59 = vpack.c.bf16 %v1502_v54, %v1501_v53  ;;  %v1687_v53 = vld [vmem:[#allocation5 + $0x8b8] sm:$0xff] }
 0x696   :  { %3102 = vmatpush3.bf16.msra.mxu0 %v3101_v58 }
 0x697   :  { %3103 = vmatprep.subr.bf16.mxu0 %v3330_v0 }
 0x69a   :  { %3105 = vmatpush3.bf16.msra.mxu0 %v3104_v61  ;;  %v1503_v61 = vld [vmem:[#allocation5 + $0x790] sm:$0xff] }
 0x69b   :  { %3106 = vmatprep.subr.bf16.mxu0 %v3330_v0  ;;  %v3122_v62 = vpack.c.bf16 %v1504_v56, %v1503_v61  ;;  %v1692_v56 = vld [vmem:[#allocation5 + $0x8e0] sm:$0xff] }
 0x69e   :  { %3108 = vmatpush3.bf16.msra.mxu0 %v3107_v4  ;;  %v1505_v4 = vld [vmem:[#allocation5 + $0x7a0] sm:$0xff] }
 0x69f   :  { %3109 = vmatprep.subr.bf16.mxu0 %v3330_v0  ;;  %v3125_v5 = vpack.c.bf16 %v1506_v63, %v1505_v4  ;;  %v1694_v63 = vld [vmem:[#allocation5 + $0x8f0] sm:$0xff] }
 0x6a2   :  { %3111 = vmatpush3.bf16.msra.mxu0 %v3110_v6  ;;  %v1507_v6 = vld [vmem:[#allocation5 + $0x7b0] sm:$0xff] }
 0x6a3   :  { %3112 = vmatprep.subr.bf16.mxu0 %v3330_v0  ;;  %v3128_v8 = vpack.c.bf16 %v1508_v7, %v1507_v6 }
 0x6a6   :  { %3114 = vmatpush3.bf16.msra.mxu0 %v3113_v9  ;;  %v1509_v9 = vld [vmem:[#allocation5 + $0x7c0] sm:$0xff] }
 0x6a7   :  { %3115 = vmatprep.subr.bf16.mxu0 %v3330_v0  ;;  %v3131_v11 = vpack.c.bf16 %v1510_v10, %v1509_v9  ;;  %v1820_v9 = vld [vmem:[#allocation7 + $0xe] ss:$0 sm:$0xff] }
 0x6aa   :  { %3117 = vmatpush3.bf16.msra.mxu0 %v3116_v12  ;;  %v1511_v12 = vld [vmem:[#allocation5 + $0x7d0] sm:$0xff] }
 0x6ab   :  { %3142 = vmatprep.subr.bf16.mxu0 %v3330_v0  ;;  %v3134_v3 = vpack.c.bf16 %v1512_v13, %v1511_v12 }
 0x760   :  { %v1198_v18 = vpop.f32.mrb[10].mxu0 }
 0x761   :  { %v3554_v20 = vadd.f32 %v1816_v17, %v1198_v18  ;;  %v2547_v21 = vpop.f32.mrb[11].mxu0  ;;  %v1516_v17 = vld [vmem:[#allocation5 + $0x7f8] sm:$0xff] }
 0x762   :  { %v3140_v18 = vpack.c.bf16 %v1516_v17, %v1515_v16  ;;  %v1592_v21 = vld [vmem:[#allocation5 + $0x808] sm:$0xff] }
 0x763   :  { %v1211_v23 = vmul.f32 %v3554_v20, %v1817_v19  ;;  %2651 = vmatmul.mubr.f32.vlgmr.msra.gmra.mrb[12].mxu0 %v3554_v20  ;;  %v1591_v19 = vld [vmem:[#allocation5 + $0x800] sm:$0xff] }
 0x764   :  { %2720 = vmatprep.mubr.msk.f32.mxu0 %vm3331_vm0, %v3332_v1 }
 0x765   :  { %v1220_v26 = vadd.f32 %v1818_v22, %v1211_v23  ;;  %v1593_v22 = vld [vmem:[#allocation5 + $0x810] sm:$0xff]  ;;  %v3143_v23 = vpack.c.bf16 %v1592_v21, %v1591_v19 }
 0x766   :  { %v3146_v25 = vpack.c.bf16 %v1594_v24, %v1593_v22 }
 0x767   :  { %v1221_v28 = vmax.f32 %v1220_v26, 0.0  ;;  %3144 = vmatpush3.bf16.msra.mxu0 %v3143_v23  ;;  %v1595_v26 = vld [vmem:[#allocation5 + $0x820] sm:$0xff] }
 0x768   :  { %3145 = vmatprep.subr.bf16.mxu0 %v3330_v0 }
 0x769   :  { %2581 = vmatmul.mubr.f32.vlgmr.msra.gmra.mrb[10].mxu1 %v1221_v28 }
 0x76a   :  { %3072 = vmatpush3.bf16.msra.mxu1 %v3071_v27  ;;  %2615 = vmatprep.mubr.msk.f32.mxu1 %vm3331_vm0, %v3332_v1  ;;  %v1596_v27 = vld [vmem:[#allocation5 + $0x828] sm:$0xff] }
 0x76b   :  { %3073 = vmatprep.subr.bf16.mxu1 %v3330_v0  ;;  %3147 = vmatpush3.bf16.msra.mxu0 %v3146_v25  ;;  %v3149_v28 = vpack.c.bf16 %v1596_v27, %v1595_v26 }
 0x76c   :  { %3148 = vmatprep.subr.bf16.mxu0 %v3330_v0 }
 0x76e   :  { %3075 = vmatpush3.bf16.msra.mxu1 %v3074_v31  ;;  %v1600_v31 = vld [vmem:[#allocation5 + $0x848] sm:$0xff] }
 0x76f   :  { %3076 = vmatprep.subr.bf16.mxu1 %v3330_v0  ;;  %3150 = vmatpush3.bf16.msra.mxu0 %v3149_v28 }
 0x770   :  { %3151 = vmatprep.subr.bf16.mxu0 %v3330_v0 }
 0x772   :  { %3078 = vmatpush3.bf16.msra.mxu1 %v3077_v34  ;;  %v1602_v34 = vld [vmem:[#allocation5 + $0x858] sm:$0xff] }
 0x773   :  { %3079 = vmatprep.subr.bf16.mxu1 %v3330_v0  ;;  %v3158_v35 = vpack.c.bf16 %v1602_v34, %v1601_v33 }
 0x776   :  { %3081 = vmatpush3.bf16.msra.mxu1 %v3080_v37  ;;  %v1604_v37 = vld [vmem:[#allocation5 + $0x868] sm:$0xff] }
 0x777   :  { %3082 = vmatprep.subr.bf16.mxu1 %v3330_v0  ;;  %v3161_v38 = vpack.c.bf16 %v1604_v37, %v1603_v36 }
 0x77a   :  { %3084 = vmatpush3.bf16.msra.mxu1 %v3083_v40  ;;  %v1606_v40 = vld [vmem:[#allocation5 + $0x878] sm:$0xff] }
 0x77b   :  { %3085 = vmatprep.subr.bf16.mxu1 %v3330_v0  ;;  %v3164_v41 = vpack.c.bf16 %v1606_v40, %v1605_v39 }
 0x77e   :  { %3087 = vmatpush3.bf16.msra.mxu1 %v3086_v43  ;;  %v1681_v43 = vld [vmem:[#allocation5 + $0x888] sm:$0xff] }
 0x77f   :  { %3088 = vmatprep.subr.bf16.mxu1 %v3330_v0  ;;  %v3167_v45 = vpack.c.bf16 %v1681_v43, %v1680_v42 }
 0x782   :  { %3090 = vmatpush3.bf16.msra.mxu1 %v3089_v46  ;;  %v1683_v46 = vld [vmem:[#allocation5 + $0x898] sm:$0xff] }
 0x783   :  { %3091 = vmatprep.subr.bf16.mxu1 %v3330_v0  ;;  %v3170_v47 = vpack.c.bf16 %v1683_v46, %v1682_v44 }
 0x786   :  { %3093 = vmatpush3.bf16.msra.mxu1 %v3092_v49  ;;  %v1685_v49 = vld [vmem:[#allocation5 + $0x8a8] sm:$0xff] }
 0x787   :  { %3118 = vmatprep.subr.bf16.mxu1 %v3330_v0 }
 0x836   :  { %v3570_v50 = vpop.f32.mrb[12].mxu0 }
 0x837   :  { %v2652_v51 = vpop.f32.mrb[13].mxu0 }
 0x838   :  { %v3173_v51 = vpack.c.bf16 %v1685_v49, %v1684_v48 }
 0x83c   :  { %v1313_v55 = vpop.f32.mrb[10].mxu1 }
 0x83d   :  { %v1314_v57 = vadd.f32 %v1819_v52, %v1313_v55  ;;  %v2582_v58 = vpop.f32.mrb[11].mxu1  ;;  %v1686_v52 = vld [vmem:[#allocation5 + $0x8b0] sm:$0xff]  ;;  %v1688_v55 = vld [vmem:[#allocation5 + $0x8c0] sm:$0xff] }
 0x83e   :  { %v3176_v54 = vpack.c.bf16 %v1687_v53, %v1686_v52 }
 0x83f   :  { %v1317_v60 = vmax.f32 %v1314_v57, 0.0  ;;  %v1689_v57 = vld [vmem:[#allocation5 + $0x8c8] sm:$0xff] }
 0x840   :  { %v3179_v58 = vpack.c.bf16 %v1689_v57, %v1688_v55 }
 0x841   :  { %2616 = vmatmul.mubr.f32.vlgmr.msra.gmra.mrb[12].mxu1 %v1317_v60  ;;  %v1691_v60 = vld [vmem:[#allocation5 + $0x8d8] sm:$0xff] }
 0x842   :  { %3120 = vmatpush3.bf16.msra.mxu1 %v3119_v59  ;;  %2685 = vmatprep.mubr.msk.f32.mxu1 %vm3331_vm0, %v3332_v1  ;;  %v1690_v59 = vld [vmem:[#allocation5 + $0x8d0] sm:$0xff] }
 0x843   :  { %3121 = vmatprep.subr.bf16.mxu1 %v3330_v0  ;;  %v3182_v61 = vpack.c.bf16 %v1691_v60, %v1690_v59 }
 0x846   :  { %3123 = vmatpush3.bf16.msra.mxu1 %v3122_v62  ;;  %v1693_v62 = vld [vmem:[#allocation5 + $0x8e8] sm:$0xff] }
 0x847   :  { %3124 = vmatprep.subr.bf16.mxu1 %v3330_v0  ;;  %v3185_v4 = vpack.c.bf16 %v1693_v62, %v1692_v56 }
 0x84a   :  { %3126 = vmatpush3.bf16.msra.mxu1 %v3125_v5  ;;  %v1695_v5 = vld [vmem:[#allocation5 + $0x8f8] sm:$0xff] }
 0x84b   :  { %3127 = vmatprep.subr.bf16.mxu1 %v3330_v0  ;;  %v3188_v6 = vpack.c.bf16 %v1695_v5, %v1694_v63 }
 0x84e   :  { %3129 = vmatpush3.bf16.msra.mxu1 %v3128_v8 }
 0x84f   :  { %3130 = vmatprep.subr.bf16.mxu1 %v3330_v0 }
 0x852   :  { %3132 = vmatpush3.bf16.msra.mxu1 %v3131_v11 }
 0x853   :  { %3133 = vmatprep.subr.bf16.mxu1 %v3330_v0 }
 0x856   :  { %3135 = vmatpush3.bf16.msra.mxu1 %v3134_v3 }
 0x857   :  { %3136 = vmatprep.subr.bf16.mxu1 %v3330_v0 }
 0x85a   :  { %3138 = vmatpush3.bf16.msra.mxu1 %v3137_v15 }
 0x85b   :  { %3139 = vmatprep.subr.bf16.mxu1 %v3330_v0 }
 0x85e   :  { %3141 = vmatpush3.bf16.msra.mxu1 %v3140_v18 }
 0x85f   :  { %3166 = vmatprep.subr.bf16.mxu1 %v3330_v0 }
 0x861   :  { %2686 = vmatmul.mubr.f32.vlgmr.msra.gmra.mrb[14].mxu1 %v3554_v20  ;;  %v1598_v20 = vld [vmem:[#allocation5 + $0x838] sm:$0xff] }
 0x862   :  { %2755 = vmatprep.mubr.msk.f32.mxu1 %vm3331_vm0, %v3332_v1  ;;  %v3152_v30 = vpack.c.bf16 %v1598_v20, %v1597_v29  ;;  %v1599_v1 = vld [vmem:[#allocation5 + $0x840] sm:$0xff]  ;;  %3168 = vmatpush3.bf16.msra.mxu1 %v3167_v45 }
 0x863   :  { %v3155_v32 = vpack.c.bf16 %v1600_v31, %v1599_v1  ;;  %3169 = vmatprep.subr.bf16.mxu1 %v3330_v0 }
 0x864   :  { %3153 = vmatpush3.bf16.msra.mxu0 %v3152_v30 }
 0x865   :  { %3154 = vmatprep.subr.bf16.mxu0 %v3330_v0 }
 0x866   :  { %3171 = vmatpush3.bf16.msra.mxu1 %v3170_v47 }
 0x867   :  { %3172 = vmatprep.subr.bf16.mxu1 %v3330_v0 }
 0x868   :  { %3156 = vmatpush3.bf16.msra.mxu0 %v3155_v32 }
 0x869   :  { %3157 = vmatprep.subr.bf16.mxu0 %v3330_v0 }
 0x86a   :  { %3174 = vmatpush3.bf16.msra.mxu1 %v3173_v51 }
 0x86b   :  { %3175 = vmatprep.subr.bf16.mxu1 %v3330_v0 }
 0x86c   :  { %3159 = vmatpush3.bf16.msra.mxu0 %v3158_v35 }
 0x86d   :  { %3160 = vmatprep.subr.bf16.mxu0 %v3330_v0 }
 0x86e   :  { %3177 = vmatpush3.bf16.msra.mxu1 %v3176_v54 }
 0x86f   :  { %3178 = vmatprep.subr.bf16.mxu1 %v3330_v0 }
 0x870   :  { %3162 = vmatpush3.bf16.msra.mxu0 %v3161_v38 }
 0x871   :  { %3163 = vmatprep.subr.bf16.mxu0 %v3330_v0 }
 0x872   :  { %3180 = vmatpush3.bf16.msra.mxu1 %v3179_v58 }
 0x873   :  { %3181 = vmatprep.subr.bf16.mxu1 %v3330_v0 }
 0x874   :  { %3165 = vmatpush3.bf16.msra.mxu0 %v3164_v41 }
 0x876   :  { %3183 = vmatpush3.bf16.msra.mxu1 %v3182_v61 }
 0x877   :  { %3184 = vmatprep.subr.bf16.mxu1 %v3330_v0 }
 0x87a   :  { %3186 = vmatpush3.bf16.msra.mxu1 %v3185_v4 }
 0x87b   :  { %3187 = vmatprep.subr.bf16.mxu1 %v3330_v0 }
 0x87e   :  { %3189 = vmatpush3.bf16.msra.mxu1 %v3188_v6 }
 0x914   :  { %v1409_v7 = vpop.f32.mrb[12].mxu1 }
 0x915   :  { %v2617_v8 = vpop.f32.mrb[13].mxu1  ;;  %v1410_v11 = vadd.f32 %v1820_v9, %v1409_v7 }
 0x934   :  { %v1583_v10 = vpop.f32.mrb[14].mxu1 }
 0x935   :  { %v1587_v12 = vmax.f32 %v3570_v50, %v1583_v10  ;;  %v2687_v13 = vpop.f32.mrb[15].mxu1 }
 0x937   :  { %v1588_v3 = vadd.f32 %v1587_v12, %v1410_v11 }
 0x939   :  { %v1589_v2 = vmax.f32 %v1588_v3, 0.0 }
 0x93b   :  { %2721 = vmatmul.mubr.f32.vlgmr.msra.gmra.mrb[14].mxu0 %v1589_v2 }
 0xa0e   :  { %v1673_v14 = vpop.f32.mrb[14].mxu0 }
 0xa0f   :  { %v2722_v15 = vpop.f32.mrb[15].mxu0  ;;  %2756 = vmatmul.mubr.f32.vlgmr.msra.gmra.mrb[16].mxu1 %v1673_v14  ;;  %1678 = vst.msk [vmem:[#allocation9] sm:$0x3] %vm1677_vm1, %v1673_v14 }
 0xa10   :  { %3282 = shalt.err (!%p3279_p0)
}
 0xa11   :  { %s3283_s5 = scalar_lea.hbm %s3628_s4, 32 }
 0xa12   :  { %p3284_p1 = scmp.ne.s32.totalorder %s3628_s4, %s3283_s5  ;;  %p3287_p2 = scmp.lt.u32.totalorder %s3283_s5, %s3628_s4 }
 0xa14   :  { %p3289_p3 = pnand %p3287_p2, %p3284_p1 }
 0xa16   :  { %3292 = shalt.err (!%p3289_p3)
}
 0xa17   :  { %1795 = dma.vmem_to_hbm [thread:$0]  %s1793_s27, 32, %s3628_s4, [#allocation10]   ;;  %v1821_v0 = vld [vmem:[#allocation7 + $0xf] ss:$0 sm:$0xff]  ;;  %vm1774_vm2 = vcmask 33792  }
 0xa18   :  { %s3334_s12 = smov [#allocation8]  }
 0xa19   :  { %s1782_s13 = sshll.u32 %s3334_s12, 4  ;;  %s1783_s13 = int_to_ptr.vmem [resolvable:$true] %s1782_s13 }
 0xa1a   :  { %s3293_s1 = scalar_lea.vmem %s1783_s13, 32  ;;  %p3298_p5 = scmp.lt.s32.totalorder %s1783_s13, %s1783_s13 }
 0xa1b   :  { %p3294_p4 = scmp.ne.s32.totalorder %s1783_s13, %s3293_s1  ;;  %p3299_p6 = scmp.lt.s32.totalorder %s3293_s1, %s3293_s1 }
 0xa1d   :  { %p3300_p7 = por %p3299_p6, %p3298_p5 }
 0xa1f   :  { %p3301_p8 = pnand %p3300_p7, %p3294_p4 }
 0xae2   :  { %v1770_v50 = vpop.f32.mrb[16].mxu1 }
 0xae3   :  { %v1771_v16 = vadd.f32 %v1821_v0, %v1770_v50  ;;  %v2757_v17 = vpop.f32.mrb[17].mxu1 }
 0xae5   :  { %1775 = vst.msk [vmem:[#allocation8] sm:$0x3] %vm1774_vm2, %v1771_v16 }
 0xae6   :  { %3304 = shalt.err (!%p3301_p8)
}
 0xae7   :  { %s3305_s4 = scalar_lea.hbm %s3627_s3, 32 }
 0xae8   :  { %p3306_p9 = scmp.ne.s32.totalorder %s3627_s3, %s3305_s4  ;;  %p3309_p10 = scmp.lt.u32.totalorder %s3305_s4, %s3627_s3 }
 0xaea   :  { %p3311_p11 = pnand %p3309_p10, %p3306_p9 }
 0xaec   :  { %3314 = shalt.err (!%p3311_p11)
}
 0xaed   :  { %1785 = dma.vmem_to_hbm [thread:$0]  %s1783_s13, 32, %s3627_s3, [#allocation4]  }
 0xaee   :  { %3319 = dma.done.wait [#allocation4], 32  }
 0xaef   :  { %3320 = vsyncadd [#allocation4], 4294967264 }
 0xaf0   :  { %3321 = dma.done.wait [#allocation10], 32  }
 0xaf1   :  { %3322 = vsyncadd [#allocation10], 4294967264 }
 0xaf2   :  { %1802 = vsyncpa [#allocation3], 1 }
 0xaf3   :  { %1803 = vsyncpa [#allocation6], 1 }
 0xaf4   :  { %1804 = vsyncpa [#allocation4], 1 }
 0xaf5   :  { %1805 = vsyncpa [#allocation10], 1 }

</bundles_post_ra>
